<compile_context>
chip_gen: v7x
topology: tpu7x:2x2x1
jax: 0.10.0
libtpu: 0.0.40
codegen_flags: <defaults>
</compile_context>

<pallas_src>
import jax
import jax.numpy as jnp
from jax import lax
from jax.experimental import pallas as pl
from jax.experimental.pallas import tpu as pltpu

# ---- model hyperparameters (small, consistent with the Lyft multi-mode head) ----
NUM_MODES = 3
FUTURE_LEN = 8
PRED_DIM = NUM_MODES * FUTURE_LEN * 2          # flattened trajectory prediction (48)
OUT_DIM = PRED_DIM + NUM_MODES                 # [pred | confidence logits]   (51)
OUT_PAD = 128                                  # lane-dense padded output width


def _round_up(x, m):
    return ((x + m - 1) // m) * m


# ---- D4 dihedral group on NCHW tensors (same index order as the PyTorch list) ----
D4 = [
    lambda x: x,
    lambda x: jnp.flip(jnp.swapaxes(x, 2, 3), 3),
    lambda x: jnp.flip(jnp.flip(x, 2), 3),
    lambda x: jnp.flip(jnp.swapaxes(x, 2, 3), 2),
    lambda x: jnp.flip(x, 3),
    lambda x: jnp.swapaxes(x, 2, 3),
    lambda x: jnp.flip(x, 2),
    lambda x: jnp.flip(jnp.flip(jnp.swapaxes(x, 2, 3), 2), 3),
]


# ------------------------------ Pallas kernel ------------------------------
def _ensemble_head_kernel(x_ref, w_ref, b_ref, out_ref):
    """Whole ensemble in one grid step.

    x_ref   : (KX, B, Dp)   bf16 features; KX == K (per-member, D4 on) or 1 (shared)
    w_ref   : (K, Dp, 128)  bf16 per-member head weights (zero-padded rows/cols)
    b_ref   : (K, 1, 128)   f32  per-member bias (zero-padded cols)
    out_ref : (K, B, 128)   f32  lane-dense slab: [:, :, :48] pred, [:, :, 48:51] softmax conf
    """
    K = w_ref.shape[0]
    KX = x_ref.shape[0]
    B = x_ref.shape[1]
    O = w_ref.shape[2]

    # Confidence-column mask, hoisted out of the member loop (broadcasts are not CSE'd).
    col = lax.broadcasted_iota(jnp.int32, (B, O), 1)
    is_conf = (col >= PRED_DIM) & (col < PRED_DIM + NUM_MODES)

    for k in range(K):                      # small unrolled loop over ensemble members
        xk = x_ref[k if KX > 1 else 0]      # (B, Dp) bf16
        out = jnp.dot(xk, w_ref[k], preferred_element_type=jnp.float32) + b_ref[k]

        # masked softmax over the 3 confidence logits, everything stays lane-dense f32
        m = jnp.max(jnp.where(is_conf, out, -jnp.inf), axis=-1, keepdims=True)
        e = jnp.exp(jnp.where(is_conf, out - m, -jnp.inf))
        denom = jnp.sum(e, axis=-1, keepdims=True)
        conf = e * pl.reciprocal(denom, approx=True)

        out_ref[k] = jnp.where(is_conf, conf, out)


def _run_ensemble_heads(x_stack, w_stack, b_stack):
    """x_stack: (KX, B, Dp) bf16, w_stack: (K, Dp, 128) bf16, b_stack: (K, 1, 128) f32."""
    KX, B, Dp = x_stack.shape
    K, _, Op = w_stack.shape
    return pl.pallas_call(
        _ensemble_head_kernel,
        out_shape=jax.ShapeDtypeStruct((K, B, Op), jnp.float32),
        grid=(1,),                                           # single step: no per-member grid overhead
        in_specs=[
            pl.BlockSpec((KX, B, Dp), lambda i: (0, 0, 0)),
            pl.BlockSpec((K, Dp, Op), lambda i: (0, 0, 0)),
            pl.BlockSpec((K, 1, Op), lambda i: (0, 0, 0)),
        ],
        out_specs=pl.BlockSpec((K, B, Op), lambda i: (0, 0, 0)),
        compiler_params=pltpu.CompilerParams(dimension_semantics=("arbitrary",)),
    )(x_stack, w_stack, b_stack)


# ------------------------------ ensemble wrapper ------------------------------
class LyftMultiDeepEnsemblePredictorPallas:
    """JAX/Pallas equivalent of LyftMultiDeepEnsemblePredictor.forward."""

    def __init__(self, num_predictors: int, in_dim: int, use_D4: bool = False, seed: int = 0):
        if num_predictors > 8:
            raise ValueError("We only support up to 8 models yet.")
        self.num_predictors = num_predictors
        self.use_D4 = use_D4
        self.in_dim = in_dim
        self.in_dim_pad = _round_up(in_dim, 128)

        # Deterministic synthetic parameters (one linear head per ensemble member).
        kw, kb = jax.random.split(jax.random.PRNGKey(seed))
        self.w = 0.02 * jax.random.normal(kw, (num_predictors, in_dim, OUT_DIM), jnp.float32)
        self.b = 0.02 * jax.random.normal(kb, (num_predictors, 1, OUT_DIM), jnp.float32)

        # Padded / narrowed copies used by the kernel (zero pad -> identical math).
        w_pad = jnp.zeros((num_predictors, self.in_dim_pad, OUT_PAD), jnp.float32)
        w_pad = w_pad.at[:, :in_dim, :OUT_DIM].set(self.w)
        self.w_kernel = w_pad.astype(jnp.bfloat16)

        b_pad = jnp.zeros((num_predictors, 1, OUT_PAD), jnp.float32)
        self.b_kernel = b_pad.at[:, :, :OUT_DIM].set(self.b)

    def _features(self, x, x_feat, B):
        f = x.reshape(B, -1)
        if x_feat is not None:
            f = jnp.concatenate([f, x_feat], axis=-1)
        pad = self.in_dim_pad - self.in_dim
        if pad:
            f = jnp.pad(f, ((0, 0), (0, pad)))       # zero-pad contraction dim to 128k
        return f.astype(jnp.float32)

    def __call__(self, x, x_feat=None):
        B = x.shape[0]
        if self.use_D4:
            assert x.shape[2] == x.shape[3], "D4 transposes require H == W"
            feats = []
            for k in range(self.num_predictors):
                # NOTE: matches the PyTorch forward exactly: x is reassigned, so the
                # D4 transforms compound across ensemble members.
                x = D4[k](x)
                feats.append(self._features(x, x_feat, B))
            x_stack = jnp.stack(feats, axis=0)                       # (K, B, Dp)
        else:
            # All members see identical features: ship one copy, broadcast in-kernel.
            x_stack = self._features(x, x_feat, B)[None]             # (1, B, Dp)

        out = _run_ensemble_heads(x_stack.astype(jnp.bfloat16), self.w_kernel, self.b_kernel)

        ys = []
        for k in range(self.num_predictors):
            pred = out[k, :, :PRED_DIM].reshape(B, NUM_MODES, FUTURE_LEN, 2)
            conf = out[k, :, PRED_DIM:PRED_DIM + NUM_MODES]
            ys.append((pred, conf))
        return ys

    # pure-JAX f32 reference of the head math, for a correctness check
    def reference(self, x, x_feat=None):
        B = x.shape[0]
        ys = []
        for k in range(self.num_predictors):
            if self.use_D4:
                x = D4[k](x)
            f = x.reshape(B, -1)
            if x_feat is not None:
                f = jnp.concatenate([f, x_feat], axis=-1)
            out = f.astype(jnp.float32) @ self.w[k] + self.b[k]
            pred = out[:, :PRED_DIM].reshape(B, NUM_MODES, FUTURE_LEN, 2)
            conf = jax.nn.softmax(out[:, PRED_DIM:], axis=-1)
            ys.append((pred, conf))
        return ys


# ------------------------------ demo ------------------------------
if __name__ == "__main__":
    B, C, H, W = 2, 4, 16, 16          # NCHW, H == W (required for the D4 transposes)
    F = 8                               # extra scalar feature width
    K = 4                               # number of ensemble members (<= 8)

    key = jax.random.PRNGKey(0)
    kx, kf = jax.random.split(key)
    x = jax.random.normal(kx, (B, C, H, W), jnp.float32)
    x_feat = jax.random.normal(kf, (B, F), jnp.float32)

    in_dim = C * H * W + F

    # loose tolerance: bf16 matmul inputs + approx reciprocal vs f32 reference
    TOL = dict(atol=2e-2, rtol=2e-2)

    # --- use_D4=True path (per-member features) ---
    model = LyftMultiDeepEnsemblePredictorPallas(K, in_dim, use_D4=True, seed=0)
    ys = model(x, x_feat)
    for pred, conf in ys:
        jax.block_until_ready(pred)
        jax.block_until_ready(conf)
    ys_ref = model.reference(x, x_feat)
    for (p, c), (pr, cr) in zip(ys, ys_ref):
        assert p.shape == (B, NUM_MODES, FUTURE_LEN, 2) and c.shape == (B, NUM_MODES)
        assert jnp.allclose(p, pr, **TOL)
        assert jnp.allclose(c, cr, **TOL)

    # --- use_D4=False path (single shared feature copy, broadcast in-kernel) ---
    model2 = LyftMultiDeepEnsemblePredictorPallas(K, in_dim, use_D4=False, seed=0)
    ys2 = model2(x, x_feat)
    for pred, conf in ys2:
        jax.block_until_ready(pred)
        jax.block_until_ready(conf)
    ys2_ref = model2.reference(x, x_feat)
    for (p, c), (pr, cr) in zip(ys2, ys2_ref):
        assert jnp.allclose(p, pr, **TOL)
        assert jnp.allclose(c, cr, **TOL)

    print("KERNEL_OK")
</pallas_src>

<mosaic_0001>
module attributes {stable_mosaic.version = 11 : i64} {
  func.func @_ensemble_head_kernel(%arg0: i32, %arg1: memref<4x2x1152xbf16, #tpu.memory_space<vmem>>, %arg2: memref<4x1152x128xbf16, #tpu.memory_space<vmem>>, %arg3: memref<4x1x128xf32, #tpu.memory_space<vmem>>, %arg4: memref<4x2x128xf32, #tpu.memory_space<vmem>>) attributes {dimension_semantics = [#tpu.dimension_semantics<arbitrary>], iteration_bounds = array<i64: 1>, scalar_prefetch = 0 : i64, scratch_operands = 0 : i64, tpu.core_type = #tpu.core_type<tc>, window_params = [{pipeline_mode = #tpu.pipeline_mode<synchronous>, transform_indices = @transform_0, window_bounds = array<i64: 4, 2, 1152>}, {pipeline_mode = #tpu.pipeline_mode<synchronous>, transform_indices = @transform_1, window_bounds = array<i64: 4, 1152, 128>}, {pipeline_mode = #tpu.pipeline_mode<synchronous>, transform_indices = @transform_2, window_bounds = array<i64: 4, 1, 128>}, {pipeline_mode = #tpu.pipeline_mode<synchronous>, transform_indices = @transform_3, window_bounds = array<i64: 4, 2, 128>}]} {
    %0 = tpu.iota {dimensions = array<i32: 1>} : vector<2x128xi32>
    %c48_i32 = arith.constant 48 : i32
    %1 = vector.broadcast %c48_i32 : i32 to vector<2x128xi32>
    %2 = arith.cmpi sge, %0, %1 : vector<2x128xi32>
    %c51_i32 = arith.constant 51 : i32
    %3 = vector.broadcast %c51_i32 : i32 to vector<2x128xi32>
    %4 = arith.cmpi slt, %0, %3 : vector<2x128xi32>
    %5 = arith.andi %2, %4 : vector<2x128xi1>
    %c0 = arith.constant 0 : index
    %c0_0 = arith.constant 0 : index
    %c0_1 = arith.constant 0 : index
    %6 = vector.load %arg1[%c0, %c0_0, %c0_1] : memref<4x2x1152xbf16, #tpu.memory_space<vmem>>, vector<1x2x1152xbf16>
    %7 = vector.shape_cast %6 : vector<1x2x1152xbf16> to vector<2x1152xbf16>
    %c0_2 = arith.constant 0 : index
    %c0_3 = arith.constant 0 : index
    %c0_4 = arith.constant 0 : index
    %8 = vector.load %arg2[%c0_2, %c0_3, %c0_4] : memref<4x1152x128xbf16, #tpu.memory_space<vmem>>, vector<1x1152x128xbf16>
    %9 = vector.shape_cast %8 : vector<1x1152x128xbf16> to vector<1152x128xbf16>
    %cst = arith.constant dense<0.000000e+00> : vector<2x128xf32>
    %10 = tpu.matmul %7, %9, %cst {dimension_numbers = #tpu.dot_dimension_numbers<[1], [0], [0], [1], [0, 0, 1, 1], [], []>} : vector<2x1152xbf16>, vector<1152x128xbf16>, vector<2x128xf32> -> vector<2x128xf32>
    %c0_5 = arith.constant 0 : index
    %c0_6 = arith.constant 0 : index
    %c0_7 = arith.constant 0 : index
    %11 = vector.load %arg3[%c0_5, %c0_6, %c0_7] : memref<4x1x128xf32, #tpu.memory_space<vmem>>, vector<1x1x128xf32>
    %12 = vector.shape_cast %11 : vector<1x1x128xf32> to vector<1x128xf32>
    %13 = vector.broadcast %12 : vector<1x128xf32> to vector<2x128xf32>
    %14 = arith.addf %10, %13 : vector<2x128xf32>
    %cst_8 = arith.constant 0xFF800000 : f32
    %15 = vector.broadcast %cst_8 : f32 to vector<2x128xf32>
    %16 = arith.select %5, %14, %15 : vector<2x128xi1>, vector<2x128xf32>
    %cst_9 = arith.constant dense<0xFF800000> : vector<2xf32>
    %17 = vector.multi_reduction <maximumf>, %16, %cst_9 [1] : vector<2x128xf32> to vector<2xf32>
    %18 = vector.shape_cast %17 : vector<2xf32> to vector<2x1xf32>
    %19 = vector.broadcast %18 : vector<2x1xf32> to vector<2x128xf32>
    %20 = arith.subf %14, %19 : vector<2x128xf32>
    %cst_10 = arith.constant 0xFF800000 : f32
    %21 = vector.broadcast %cst_10 : f32 to vector<2x128xf32>
    %22 = arith.select %5, %20, %21 : vector<2x128xi1>, vector<2x128xf32>
    %23 = math.exp %22 : vector<2x128xf32>
    %cst_11 = arith.constant dense<0.000000e+00> : vector<2xf32>
    %24 = vector.multi_reduction <add>, %23, %cst_11 [1] : vector<2x128xf32> to vector<2xf32>
    %25 = vector.shape_cast %24 : vector<2xf32> to vector<2x1xf32>
    %26 = tpu.reciprocal %25 {approx = true} : vector<2x1xf32> -> vector<2x1xf32>
    %27 = vector.broadcast %26 : vector<2x1xf32> to vector<2x128xf32>
    %28 = arith.mulf %23, %27 : vector<2x128xf32>
    %29 = arith.select %5, %28, %14 : vector<2x128xi1>, vector<2x128xf32>
    %c0_12 = arith.constant 0 : index
    %c0_13 = arith.constant 0 : index
    %c0_14 = arith.constant 0 : index
    %30 = vector.load %arg4[%c0_12, %c0_13, %c0_14] : memref<4x2x128xf32, #tpu.memory_space<vmem>>, vector<1x2x128xf32>
    %31 = vector.shape_cast %30 : vector<1x2x128xf32> to vector<2x128xf32>
    %32 = vector.shape_cast %29 : vector<2x128xf32> to vector<1x2x128xf32>
    tpu.vector_store %arg4[%c0_12, %c0_13, %c0_14], %32 {strides = array<i32>} : memref<4x2x128xf32, #tpu.memory_space<vmem>>, vector<1x2x128xf32>,
    %c1 = arith.constant 1 : index
    %c0_15 = arith.constant 0 : index
    %c0_16 = arith.constant 0 : index
    %33 = vector.load %arg1[%c1, %c0_15, %c0_16] : memref<4x2x1152xbf16, #tpu.memory_space<vmem>>, vector<1x2x1152xbf16>
    %34 = vector.shape_cast %33 : vector<1x2x1152xbf16> to vector<2x1152xbf16>
    %c1_17 = arith.constant 1 : index
    %c0_18 = arith.constant 0 : index
    %c0_19 = arith.constant 0 : index
    %35 = vector.load %arg2[%c1_17, %c0_18, %c0_19] : memref<4x1152x128xbf16, #tpu.memory_space<vmem>>, vector<1x1152x128xbf16>
    %36 = vector.shape_cast %35 : vector<1x1152x128xbf16> to vector<1152x128xbf16>
    %cst_20 = arith.constant dense<0.000000e+00> : vector<2x128xf32>
    %37 = tpu.matmul %34, %36, %cst_20 {dimension_numbers = #tpu.dot_dimension_numbers<[1], [0], [0], [1], [0, 0, 1, 1], [], []>} : vector<2x1152xbf16>, vector<1152x128xbf16>, vector<2x128xf32> -> vector<2x128xf32>
    %c1_21 = arith.constant 1 : index
    %c0_22 = arith.constant 0 : index
    %c0_23 = arith.constant 0 : index
    %38 = vector.load %arg3[%c1_21, %c0_22, %c0_23] : memref<4x1x128xf32, #tpu.memory_space<vmem>>, vector<1x1x128xf32>
    %39 = vector.shape_cast %38 : vector<1x1x128xf32> to vector<1x128xf32>
    %40 = vector.broadcast %39 : vector<1x128xf32> to vector<2x128xf32>
    %41 = arith.addf %37, %40 : vector<2x128xf32>
    %cst_24 = arith.constant 0xFF800000 : f32
    %42 = vector.broadcast %cst_24 : f32 to vector<2x128xf32>
    %43 = arith.select %5, %41, %42 : vector<2x128xi1>, vector<2x128xf32>
    %cst_25 = arith.constant dense<0xFF800000> : vector<2xf32>
    %44 = vector.multi_reduction <maximumf>, %43, %cst_25 [1] : vector<2x128xf32> to vector<2xf32>
    %45 = vector.shape_cast %44 : vector<2xf32> to vector<2x1xf32>
    %46 = vector.broadcast %45 : vector<2x1xf32> to vector<2x128xf32>
    %47 = arith.subf %41, %46 : vector<2x128xf32>
    %cst_26 = arith.constant 0xFF800000 : f32
    %48 = vector.broadcast %cst_26 : f32 to vector<2x128xf32>
    %49 = arith.select %5, %47, %48 : vector<2x128xi1>, vector<2x128xf32>
    %50 = math.exp %49 : vector<2x128xf32>
    %cst_27 = arith.constant dense<0.000000e+00> : vector<2xf32>
    %51 = vector.multi_reduction <add>, %50, %cst_27 [1] : vector<2x128xf32> to vector<2xf32>
    %52 = vector.shape_cast %51 : vector<2xf32> to vector<2x1xf32>
    %53 = tpu.reciprocal %52 {approx = true} : vector<2x1xf32> -> vector<2x1xf32>
    %54 = vector.broadcast %53 : vector<2x1xf32> to vector<2x128xf32>
    %55 = arith.mulf %50, %54 : vector<2x128xf32>
    %56 = arith.select %5, %55, %41 : vector<2x128xi1>, vector<2x128xf32>
    %c1_28 = arith.constant 1 : index
    %c0_29 = arith.constant 0 : index
    %c0_30 = arith.constant 0 : index
    %57 = vector.load %arg4[%c1_28, %c0_29, %c0_30] : memref<4x2x128xf32, #tpu.memory_space<vmem>>, vector<1x2x128xf32>
    %58 = vector.shape_cast %57 : vector<1x2x128xf32> to vector<2x128xf32>
    %59 = vector.shape_cast %56 : vector<2x128xf32> to vector<1x2x128xf32>
    tpu.vector_store %arg4[%c1_28, %c0_29, %c0_30], %59 {strides = array<i32>} : memref<4x2x128xf32, #tpu.memory_space<vmem>>, vector<1x2x128xf32>,
    %c2 = arith.constant 2 : index
    %c0_31 = arith.constant 0 : index
    %c0_32 = arith.constant 0 : index
    %60 = vector.load %arg1[%c2, %c0_31, %c0_32] : memref<4x2x1152xbf16, #tpu.memory_space<vmem>>, vector<1x2x1152xbf16>
    %61 = vector.shape_cast %60 : vector<1x2x1152xbf16> to vector<2x1152xbf16>
    %c2_33 = arith.constant 2 : index
    %c0_34 = arith.constant 0 : index
    %c0_35 = arith.constant 0 : index
    %62 = vector.load %arg2[%c2_33, %c0_34, %c0_35] : memref<4x1152x128xbf16, #tpu.memory_space<vmem>>, vector<1x1152x128xbf16>
    %63 = vector.shape_cast %62 : vector<1x1152x128xbf16> to vector<1152x128xbf16>
    %cst_36 = arith.constant dense<0.000000e+00> : vector<2x128xf32>
    %64 = tpu.matmul %61, %63, %cst_36 {dimension_numbers = #tpu.dot_dimension_numbers<[1], [0], [0], [1], [0, 0, 1, 1], [], []>} : vector<2x1152xbf16>, vector<1152x128xbf16>, vector<2x128xf32> -> vector<2x128xf32>
    %c2_37 = arith.constant 2 : index
    %c0_38 = arith.constant 0 : index
    %c0_39 = arith.constant 0 : index
    %65 = vector.load %arg3[%c2_37, %c0_38, %c0_39] : memref<4x1x128xf32, #tpu.memory_space<vmem>>, vector<1x1x128xf32>
    %66 = vector.shape_cast %65 : vector<1x1x128xf32> to vector<1x128xf32>
    %67 = vector.broadcast %66 : vector<1x128xf32> to vector<2x128xf32>
    %68 = arith.addf %64, %67 : vector<2x128xf32>
    %cst_40 = arith.constant 0xFF800000 : f32
    %69 = vector.broadcast %cst_40 : f32 to vector<2x128xf32>
    %70 = arith.select %5, %68, %69 : vector<2x128xi1>, vector<2x128xf32>
    %cst_41 = arith.constant dense<0xFF800000> : vector<2xf32>
    %71 = vector.multi_reduction <maximumf>, %70, %cst_41 [1] : vector<2x128xf32> to vector<2xf32>
    %72 = vector.shape_cast %71 : vector<2xf32> to vector<2x1xf32>
    %73 = vector.broadcast %72 : vector<2x1xf32> to vector<2x128xf32>
    %74 = arith.subf %68, %73 : vector<2x128xf32>
    %cst_42 = arith.constant 0xFF800000 : f32
    %75 = vector.broadcast %cst_42 : f32 to vector<2x128xf32>
    %76 = arith.select %5, %74, %75 : vector<2x128xi1>, vector<2x128xf32>
    %77 = math.exp %76 : vector<2x128xf32>
    %cst_43 = arith.constant dense<0.000000e+00> : vector<2xf32>
    %78 = vector.multi_reduction <add>, %77, %cst_43 [1] : vector<2x128xf32> to vector<2xf32>
    %79 = vector.shape_cast %78 : vector<2xf32> to vector<2x1xf32>
    %80 = tpu.reciprocal %79 {approx = true} : vector<2x1xf32> -> vector<2x1xf32>
    %81 = vector.broadcast %80 : vector<2x1xf32> to vector<2x128xf32>
    %82 = arith.mulf %77, %81 : vector<2x128xf32>
    %83 = arith.select %5, %82, %68 : vector<2x128xi1>, vector<2x128xf32>
    %c2_44 = arith.constant 2 : index
    %c0_45 = arith.constant 0 : index
    %c0_46 = arith.constant 0 : index
    %84 = vector.load %arg4[%c2_44, %c0_45, %c0_46] : memref<4x2x128xf32, #tpu.memory_space<vmem>>, vector<1x2x128xf32>
    %85 = vector.shape_cast %84 : vector<1x2x128xf32> to vector<2x128xf32>
    %86 = vector.shape_cast %83 : vector<2x128xf32> to vector<1x2x128xf32>
    tpu.vector_store %arg4[%c2_44, %c0_45, %c0_46], %86 {strides = array<i32>} : memref<4x2x128xf32, #tpu.memory_space<vmem>>, vector<1x2x128xf32>,
    %c3 = arith.constant 3 : index
    %c0_47 = arith.constant 0 : index
    %c0_48 = arith.constant 0 : index
    %87 = vector.load %arg1[%c3, %c0_47, %c0_48] : memref<4x2x1152xbf16, #tpu.memory_space<vmem>>, vector<1x2x1152xbf16>
    %88 = vector.shape_cast %87 : vector<1x2x1152xbf16> to vector<2x1152xbf16>
    %c3_49 = arith.constant 3 : index
    %c0_50 = arith.constant 0 : index
    %c0_51 = arith.constant 0 : index
    %89 = vector.load %arg2[%c3_49, %c0_50, %c0_51] : memref<4x1152x128xbf16, #tpu.memory_space<vmem>>, vector<1x1152x128xbf16>
    %90 = vector.shape_cast %89 : vector<1x1152x128xbf16> to vector<1152x128xbf16>
    %cst_52 = arith.constant dense<0.000000e+00> : vector<2x128xf32>
    %91 = tpu.matmul %88, %90, %cst_52 {dimension_numbers = #tpu.dot_dimension_numbers<[1], [0], [0], [1], [0, 0, 1, 1], [], []>} : vector<2x1152xbf16>, vector<1152x128xbf16>, vector<2x128xf32> -> vector<2x128xf32>
    %c3_53 = arith.constant 3 : index
    %c0_54 = arith.constant 0 : index
    %c0_55 = arith.constant 0 : index
    %92 = vector.load %arg3[%c3_53, %c0_54, %c0_55] : memref<4x1x128xf32, #tpu.memory_space<vmem>>, vector<1x1x128xf32>
    %93 = vector.shape_cast %92 : vector<1x1x128xf32> to vector<1x128xf32>
    %94 = vector.broadcast %93 : vector<1x128xf32> to vector<2x128xf32>
    %95 = arith.addf %91, %94 : vector<2x128xf32>
    %cst_56 = arith.constant 0xFF800000 : f32
    %96 = vector.broadcast %cst_56 : f32 to vector<2x128xf32>
    %97 = arith.select %5, %95, %96 : vector<2x128xi1>, vector<2x128xf32>
    %cst_57 = arith.constant dense<0xFF800000> : vector<2xf32>
    %98 = vector.multi_reduction <maximumf>, %97, %cst_57 [1] : vector<2x128xf32> to vector<2xf32>
    %99 = vector.shape_cast %98 : vector<2xf32> to vector<2x1xf32>
    %100 = vector.broadcast %99 : vector<2x1xf32> to vector<2x128xf32>
    %101 = arith.subf %95, %100 : vector<2x128xf32>
    %cst_58 = arith.constant 0xFF800000 : f32
    %102 = vector.broadcast %cst_58 : f32 to vector<2x128xf32>
    %103 = arith.select %5, %101, %102 : vector<2x128xi1>, vector<2x128xf32>
    %104 = math.exp %103 : vector<2x128xf32>
    %cst_59 = arith.constant dense<0.000000e+00> : vector<2xf32>
    %105 = vector.multi_reduction <add>, %104, %cst_59 [1] : vector<2x128xf32> to vector<2xf32>
    %106 = vector.shape_cast %105 : vector<2xf32> to vector<2x1xf32>
    %107 = tpu.reciprocal %106 {approx = true} : vector<2x1xf32> -> vector<2x1xf32>
    %108 = vector.broadcast %107 : vector<2x1xf32> to vector<2x128xf32>
    %109 = arith.mulf %104, %108 : vector<2x128xf32>
    %110 = arith.select %5, %109, %95 : vector<2x128xi1>, vector<2x128xf32>
    %c3_60 = arith.constant 3 : index
    %c0_61 = arith.constant 0 : index
    %c0_62 = arith.constant 0 : index
    %111 = vector.load %arg4[%c3_60, %c0_61, %c0_62] : memref<4x2x128xf32, #tpu.memory_space<vmem>>, vector<1x2x128xf32>
    %112 = vector.shape_cast %111 : vector<1x2x128xf32> to vector<2x128xf32>
    %113 = vector.shape_cast %110 : vector<2x128xf32> to vector<1x2x128xf32>
    tpu.vector_store %arg4[%c3_60, %c0_61, %c0_62], %113 {strides = array<i32>} : memref<4x2x128xf32, #tpu.memory_space<vmem>>, vector<1x2x128xf32>,
    return
  }
  func.func @transform_0(%arg0: i32) -> (i32, i32, i32) {
    %c0_i32 = arith.constant 0 : i32
    %c0_i32_0 = arith.constant 0 : i32
    %c0_i32_1 = arith.constant 0 : i32
    %c0_i32_2 = arith.constant 0 : i32
    return %c0_i32, %c0_i32_0, %c0_i32_1 : i32, i32, i32
  }
  func.func @transform_1(%arg0: i32) -> (i32, i32, i32) {
    %c0_i32 = arith.constant 0 : i32
    %c0_i32_0 = arith.constant 0 : i32
    %c0_i32_1 = arith.constant 0 : i32
    %c0_i32_2 = arith.constant 0 : i32
    return %c0_i32, %c0_i32_0, %c0_i32_1 : i32, i32, i32
  }
  func.func @transform_2(%arg0: i32) -> (i32, i32, i32) {
    %c0_i32 = arith.constant 0 : i32
    %c0_i32_0 = arith.constant 0 : i32
    %c0_i32_1 = arith.constant 0 : i32
    %c0_i32_2 = arith.constant 0 : i32
    return %c0_i32, %c0_i32_0, %c0_i32_1 : i32, i32, i32
  }
  func.func @transform_3(%arg0: i32) -> (i32, i32, i32) {
    %c0_i32 = arith.constant 0 : i32
    %c0_i32_0 = arith.constant 0 : i32
    %c0_i32_1 = arith.constant 0 : i32
    %c0_i32_2 = arith.constant 0 : i32
    return %c0_i32, %c0_i32_0, %c0_i32_1 : i32, i32, i32
  }
}

</mosaic_0001>

<bundles_post_ra>
// kernel: tpu_custom_call.1
= control target key start
LH: loop header
LB: loop body
LE: loop exit
PB: predicated region body
PF: predicated region fallthrough
CT: control target
= control target key end

     0   :  { %8 = vsyncpa [#allocation3], 0  ;;  %s5039_s0 = inlined_call_operand.hbm [shape: bf16[4,2,1152], index: 0, kind: input, shape index: {}]   ;;  %s5040_s1 = inlined_call_operand.hbm [shape: bf16[4,1152,128], index: 1, kind: input, shape index: {}]   ;;  %s5041_s2 = inlined_call_operand.hbm [shape: f32[4,1,128], index: 2, kind: input, shape index: {}]   ;;  %s5042_s3 = inlined_call_operand.hbm [shape: f32[4,2,128], index: 3, kind: output, shape index: {}]  }
   0x1   :  { %9 = vsyncpa [#allocation6], 0 }
   0x2   :  { %10 = vsyncpa [#allocation4], 0  ;;  %s4770_s12 = smov [#allocation5]   ;;  %s4676_s16 = scalar_lea.hbm %s5040_s1, 36864 }
   0x3   :  { %s28_s13 = sshll.u32 %s4770_s12, 4  ;;  %p4677_p0 = scmp.ne.s32.totalorder %s5040_s1, %s4676_s16  ;;  %s29_s13 = int_to_ptr.vmem [resolvable:$true] %s28_s13 }
   0x4   :  { %p4680_p1 = scmp.lt.u32.totalorder %s4676_s16, %s5040_s1 }
   0x6   :  { %p4682_p2 = pnand %p4680_p1, %p4677_p0 }
   0x8   :  { %4685 = shalt.err (!%p4682_p2)
}
   0x9   :  { %s4686_s21 = scalar_lea.vmem %s29_s13, 36864  ;;  %p4691_p4 = scmp.lt.s32.totalorder %s29_s13, %s29_s13 }
   0xa   :  { %p4687_p3 = scmp.ne.s32.totalorder %s29_s13, %s4686_s21  ;;  %p4692_p5 = scmp.lt.s32.totalorder %s4686_s21, %s4686_s21 }
   0xc   :  { %p4693_p6 = por %p4692_p5, %p4691_p4 }
   0xe   :  { %p4694_p7 = pnand %p4693_p6, %p4687_p3 }
  0x10   :  { %4697 = shalt.err (!%p4694_p7)
}
  0x11   :  { %s4771_s22 = smov 64   ;;  %s4772_s23 = smov 4  }
  0x12   :  { %34 = dma.hbm_to_vmem [thread:$0]  %s5040_s1, 36864, %s29_s13, [#allocation6], %s4771_s22, %s4771_s22, %s4772_s23  }
  0x13   :  { %s4773_s26 = smov [#allocation2]   ;;  %s4698_s30 = scalar_lea.hbm %s5039_s0, 576 }
  0x14   :  { %s16_s27 = sshll.u32 %s4773_s26, 4  ;;  %p4699_p8 = scmp.ne.s32.totalorder %s5039_s0, %s4698_s30  ;;  %s17_s27 = int_to_ptr.vmem [resolvable:$true] %s16_s27 }
  0x15   :  { %p4702_p9 = scmp.lt.u32.totalorder %s4698_s30, %s5039_s0 }
  0x17   :  { %p4704_p10 = pnand %p4702_p9, %p4699_p8 }
  0x19   :  { %4707 = shalt.err (!%p4704_p10)
}
  0x1a   :  { %s4708_s8 = scalar_lea.vmem %s17_s27, 576  ;;  %p4713_p12 = scmp.lt.s32.totalorder %s17_s27, %s17_s27 }
  0x1b   :  { %p4709_p11 = scmp.ne.s32.totalorder %s17_s27, %s4708_s8  ;;  %p4714_p13 = scmp.lt.s32.totalorder %s4708_s8, %s4708_s8 }
  0x1d   :  { %p4715_p0 = por %p4714_p13, %p4713_p12 }
  0x1f   :  { %p4716_p1 = pnand %p4715_p0, %p4709_p11 }
  0x21   :  { %4719 = shalt.err (!%p4716_p1)
}
  0x22   :  { %s4774_s1 = smov 144   ;;  %s4775_s9 = smov 9  }
  0x23   :  { %22 = dma.hbm_to_vmem [thread:$0]  %s5039_s0, 576, %s17_s27, [#allocation3], %s4774_s1, %s4774_s1, %s4775_s9  }
  0x24   :  { %s4776_s12 = smov [#allocation7]   ;;  %s4720_s16 = scalar_lea.hbm %s5041_s2, 64 }
  0x25   :  { %s40_s13 = sshll.u32 %s4776_s12, 4  ;;  %p4721_p2 = scmp.ne.s32.totalorder %s5041_s2, %s4720_s16  ;;  %s41_s13 = int_to_ptr.vmem [resolvable:$true] %s40_s13 }
  0x26   :  { %p4724_p3 = scmp.lt.u32.totalorder %s4720_s16, %s5041_s2 }
  0x28   :  { %p4726_p4 = pnand %p4724_p3, %p4721_p2 }
  0x2a   :  { %4729 = shalt.err (!%p4726_p4)
}
  0x2b   :  { %s4730_s21 = scalar_lea.vmem %s41_s13, 64  ;;  %p4735_p6 = scmp.lt.s32.totalorder %s41_s13, %s41_s13 }
  0x2c   :  { %p4731_p5 = scmp.ne.s32.totalorder %s41_s13, %s4730_s21  ;;  %p4736_p7 = scmp.lt.s32.totalorder %s4730_s21, %s4730_s21 }
  0x2e   :  { %p4737_p8 = por %p4736_p7, %p4735_p6 }
  0x30   :  { %p4738_p9 = pnand %p4737_p8, %p4731_p5 }
  0x32   :  { %4741 = shalt.err (!%p4738_p9)
}
  0x33   :  { %s4777_s0 = smov 16   ;;  %s4778_s22 = smov 1  }
  0x34   :  { %46 = dma.hbm_to_vmem [thread:$0]  %s5041_s2, 64, %s41_s13, [#allocation6], %s4777_s0, %s4777_s0, %s4778_s22  }
  0x35   :  { %4764 = dma.done.wait [#allocation3], 576  }
  0x36   :  { %4765 = vsyncadd [#allocation3], 4294966720 }
  0x37   :  { %4766 = dma.done.wait [#allocation6], 36928  }
  0x38   :  { %4767 = vsyncadd [#allocation6], 4294930368  ;;  %v4368_v0 = vld [vmem:[#allocation5 + $0x40] sm:$0xff]   ;;  %v4372_v4 = vld [vmem:[#allocation5 + $0x48] sm:$0xff]   ;;  %v57_v21 = vlaneseq  ;;  %v4779_v22 = vmov 1966171168  }
  0x39   :  { %v4369_v1 = vld [vmem:[#allocation5] sm:$0xff]   ;;  %3885 = vmatprep.subr.bf16.mxu0 %v4368_v0  ;;  %v4373_v5 = vld [vmem:[#allocation5 + $0x8] sm:$0xff]   ;;  %v4376_v8 = vld [vmem:[#allocation5 + $0x50] sm:$0xff]   ;;  %v219_v23 = vunpack.c.l.s4 %v4779_v22  ;;  %v4780_v22 = vmov 0.0   ;;  %vm4781_vm0 = vmmov 0   ;;  %vm922_vm4 = vcmask 1041408  }
  0x3a   :  { %v4370_v2 = vld [vmem:[#allocation5 + $0xc0] sm:$0xff]   ;;  %3886 = vmatpush3.bf16.msra.mxu0 %v4369_v1  ;;  %v4374_v6 = vld [vmem:[#allocation5 + $0xc8] sm:$0xff]   ;;  %v4377_v9 = vld [vmem:[#allocation5 + $0x10] sm:$0xff]   ;;  %v222_v29 = vshrl.u32 %v57_v21, 7  ;;  %s4782_s2 = smov [#allocation8]  }
  0x3b   :  { %v4371_v3 = vld [vmem:[#allocation5 + $0x80] sm:$0xff]   ;;  %3907 = vmatprep.subr.bf16.mxu1 %v4370_v2  ;;  %3887 = vmatprep.subr.bf16.mxu0 %v4372_v4  ;;  %v4375_v7 = vld [vmem:[#allocation5 + $0x88] sm:$0xff]   ;;  %v4378_v10 = vld [vmem:[#allocation5 + $0xd0] sm:$0xff]   ;;  %v220_v28 = vunpack.c.0.s8 %v219_v23  ;;  %s3576_s25 = sshll.u32 %s4782_s2, 4  ;;  %s3577_s25 = int_to_ptr.vmem [resolvable:$true] %s3576_s25 }
  0x3c   :  { %3908 = vmatpush3.bf16.msra.mxu1 %v4371_v3  ;;  %v4379_v11 = vld [vmem:[#allocation5 + $0x90] sm:$0xff]   ;;  %v4380_v12 = vld [vmem:[#allocation5 + $0x58] sm:$0xff]   ;;  %v4384_v16 = vld [vmem:[#allocation5 + $0x60] sm:$0xff]   ;;  %s4742_s26 = scalar_lea.vmem %s3577_s25, 128  ;;  %p4747_p11 = scmp.lt.s32.totalorder %s3577_s25, %s3577_s25 }
  0x3d   :  { %3909 = vmatprep.subr.bf16.mxu1 %v4374_v6  ;;  %v4381_v13 = vld [vmem:[#allocation5 + $0x18] sm:$0xff]   ;;  %v4385_v17 = vld [vmem:[#allocation5 + $0x20] sm:$0xff]   ;;  %v4388_v20 = vld [vmem:[#allocation5 + $0x68] sm:$0xff]   ;;  %v4842_v34 = vsub.s32 %v220_v28, %v222_v29  ;;  %p4743_p10 = scmp.ne.s32.totalorder %s3577_s25, %s4742_s26  ;;  %p4748_p12 = scmp.lt.s32.totalorder %s4742_s26, %s4742_s26 }
  0x3e   :  { %3888 = vmatpush3.bf16.msra.mxu0 %v4373_v5  ;;  %v4382_v14 = vld [vmem:[#allocation5 + $0xd8] sm:$0xff]   ;;  %v4386_v18 = vld [vmem:[#allocation5 + $0xe0] sm:$0xff]   ;;  %v4389_v24 = vld [vmem:[#allocation5 + $0x28] sm:$0xff]  }
  0x3f   :  { %3889 = vmatprep.subr.bf16.mxu0 %v4376_v8  ;;  %v4383_v15 = vld [vmem:[#allocation5 + $0x98] sm:$0xff]   ;;  %v4387_v19 = vld [vmem:[#allocation5 + $0xa0] sm:$0xff]   ;;  %v4390_v25 = vld [vmem:[#allocation5 + $0xe8] sm:$0xff]   ;;  %p4749_p13 = por %p4748_p12, %p4747_p11 }
  0x40   :  { %3910 = vmatpush3.bf16.msra.mxu1 %v4375_v7  ;;  %v4391_v26 = vld [vmem:[#allocation5 + $0xa8] sm:$0xff]   ;;  %v4392_v27 = vld [vmem:[#allocation5 + $0x70] sm:$0xff]   ;;  %v4396_v33 = vld [vmem:[#allocation5 + $0x78] sm:$0xff]  }
  0x41   :  { %3911 = vmatprep.subr.bf16.mxu1 %v4378_v10  ;;  %v4393_v30 = vld [vmem:[#allocation5 + $0x30] sm:$0xff]   ;;  %v4397_v35 = vld [vmem:[#allocation5 + $0x38] sm:$0xff]   ;;  %v4401_v41 = vld [vmem:[#allocation5 + $0x140] sm:$0xff]   ;;  %p4750_p0 = pnand %p4749_p13, %p4743_p10 }
  0x42   :  { %3890 = vmatpush3.bf16.msra.mxu0 %v4377_v9  ;;  %v4394_v31 = vld [vmem:[#allocation5 + $0xf0] sm:$0xff]   ;;  %v4398_v36 = vld [vmem:[#allocation5 + $0xf8] sm:$0xff]   ;;  %v4403_v45 = vld [vmem:[#allocation5 + $0x1c0] sm:$0xff]  }
  0x43   :  { %3891 = vmatprep.subr.bf16.mxu0 %v4380_v12  ;;  %v4395_v32 = vld [vmem:[#allocation5 + $0xb0] sm:$0xff]   ;;  %v62_v37 = vld [vmem:[#allocation2] sm:$0xff]  ;;  %v4405_v50 = vld [vmem:[#allocation5 + $0x148] sm:$0xff]  }
  0x44   :  { %3912 = vmatpush3.bf16.msra.mxu1 %v4379_v11  ;;  %v217_v38 = vcombine.high %v62_v37, %v62_v37  ;;  %v224_v39 = vrot.slane %v62_v37, %v4842_v34  ;;  %v4400_v40 = vld [vmem:[#allocation5 + $0xb8] sm:$0xff]   ;;  %v4402_v47 = vld [vmem:[#allocation5 + $0x100] sm:$0xff]   ;;  %v4407_v54 = vld [vmem:[#allocation5 + $0x1c8] sm:$0xff]  }
  0x45   :  { %3913 = vmatprep.subr.bf16.mxu1 %v4382_v14  ;;  %v4404_v52 = vld [vmem:[#allocation5 + $0x180] sm:$0xff]   ;;  %v4406_v55 = vld [vmem:[#allocation5 + $0x108] sm:$0xff]   ;;  %v4409_v57 = vld [vmem:[#allocation5 + $0x150] sm:$0xff]  }
  0x46   :  { %3892 = vmatpush3.bf16.msra.mxu0 %v4381_v13  ;;  %v232_v42 = vcombine.high %v224_v39, %v224_v39  ;;  %v240_v43 = vrot.slane %v224_v39, %v4842_v34  ;;  %v4847_v44 = vrot.slane %v217_v38, %v4842_v34  ;;  %v4408_v58 = vld [vmem:[#allocation5 + $0x188] sm:$0xff]   ;;  %v4411_v59 = vld [vmem:[#allocation5 + $0x1d0] sm:$0xff]   ;;  %v4413_v61 = vld [vmem:[#allocation5 + $0x158] sm:$0xff]  }
  0x47   :  { %3893 = vmatprep.subr.bf16.mxu0 %v4384_v16  ;;  %v4410_v60 = vld [vmem:[#allocation5 + $0x110] sm:$0xff]   ;;  %v4415_v63 = vld [vmem:[#allocation5 + $0x1d8] sm:$0xff]   ;;  %v4417_v1 = vld [vmem:[#allocation5 + $0x160] sm:$0xff]  }
  0x48   :  { %3914 = vmatpush3.bf16.msra.mxu1 %v4383_v15  ;;  %v254_v46 = vrot.slane %v232_v42, %v4842_v34  ;;  %v233_v48 = vcombine.high %v4847_v44, %v4847_v44  ;;  %v262_v49 = vcombine.high %v240_v43, %v240_v43  ;;  %v4412_v62 = vld [vmem:[#allocation5 + $0x190] sm:$0xff]   ;;  %v4414_v0 = vld [vmem:[#allocation5 + $0x118] sm:$0xff]   ;;  %v4419_v3 = vld [vmem:[#allocation5 + $0x1e0] sm:$0xff]  }
  0x49   :  { %3915 = vmatprep.subr.bf16.mxu1 %v4386_v18  ;;  %v4416_v2 = vld [vmem:[#allocation5 + $0x198] sm:$0xff]   ;;  %v4418_v4 = vld [vmem:[#allocation5 + $0x120] sm:$0xff]   ;;  %v4421_v5 = vld [vmem:[#allocation5 + $0x168] sm:$0xff]  }
  0x4a   :  { %3894 = vmatpush3.bf16.msra.mxu0 %v4385_v17  ;;  %753 = vmatprep.mubr.bf16.mxu0 %v254_v46  ;;  %v264_v51 = vcombine.high %v254_v46, %v254_v46  ;;  %v261_v53 = vrot.slane %v233_v48, %v4842_v34  ;;  %v4420_v6 = vld [vmem:[#allocation5 + $0x1a0] sm:$0xff]   ;;  %v4423_v7 = vld [vmem:[#allocation5 + $0x1e8] sm:$0xff]   ;;  %v4425_v9 = vld [vmem:[#allocation5 + $0x170] sm:$0xff]   ;;  %v247_v17 = vrot.slane %v4847_v44, %v4842_v34 }
  0x4b   :  { %3895 = vmatprep.subr.bf16.mxu0 %v4388_v20  ;;  %v4422_v8 = vld [vmem:[#allocation5 + $0x128] sm:$0xff]   ;;  %v4427_v11 = vld [vmem:[#allocation5 + $0x1f0] sm:$0xff]   ;;  %v4429_v13 = vld [vmem:[#allocation5 + $0x178] sm:$0xff]  }
  0x4c   :  { %3916 = vmatpush3.bf16.msra.mxu1 %v4387_v19  ;;  %793 = vmatprep.mubr.bf16.mxu1 %v264_v51  ;;  %v265_v56 = vcombine.high %v261_v53, %v261_v53  ;;  %v4424_v10 = vld [vmem:[#allocation5 + $0x1a8] sm:$0xff]   ;;  %v4426_v12 = vld [vmem:[#allocation5 + $0x130] sm:$0xff]   ;;  %v4431_v15 = vld [vmem:[#allocation5 + $0x1f8] sm:$0xff]   ;;  %v263_v23 = vcombine.high %v247_v17, %v247_v17 }
  0x4d   :  { %3917 = vmatprep.subr.bf16.mxu1 %v4390_v25  ;;  %v4428_v14 = vld [vmem:[#allocation5 + $0x1b0] sm:$0xff]   ;;  %v4430_v16 = vld [vmem:[#allocation5 + $0x138] sm:$0xff]   ;;  %v4434_v19 = vld [vmem:[#allocation5 + $0x280] sm:$0xff]  }
  0x4e   :  { %3896 = vmatpush3.bf16.msra.mxu0 %v4389_v24  ;;  %v4432_v18 = vld [vmem:[#allocation5 + $0x1b8] sm:$0xff]   ;;  %v4433_v20 = vld [vmem:[#allocation5 + $0x200] sm:$0xff]   ;;  %v4437_v25 = vld [vmem:[#allocation5 + $0x288] sm:$0xff]  }
  0x4f   :  { %3897 = vmatprep.subr.bf16.mxu0 %v4392_v27  ;;  %v4435_v24 = vld [vmem:[#allocation5 + $0x240] sm:$0xff]   ;;  %v4438_v27 = vld [vmem:[#allocation5 + $0x248] sm:$0xff]   ;;  %v4440_v28 = vld [vmem:[#allocation5 + $0x290] sm:$0xff]  }
  0x50   :  { %3918 = vmatpush3.bf16.msra.mxu1 %v4391_v26  ;;  %v4436_v26 = vld [vmem:[#allocation5 + $0x208] sm:$0xff]   ;;  %v4439_v29 = vld [vmem:[#allocation5 + $0x210] sm:$0xff]   ;;  %v4447_v37 = vld [vmem:[#allocation5 + $0x260] sm:$0xff]  }
  0x51   :  { %3919 = vmatprep.subr.bf16.mxu1 %v4394_v31  ;;  %v4443_v31 = vld [vmem:[#allocation5 + $0x298] sm:$0xff]   ;;  %v4449_v38 = vld [vmem:[#allocation5 + $0x2a8] sm:$0xff]   ;;  %v4452_v42 = vld [vmem:[#allocation5 + $0x2b0] sm:$0xff]  }
  0x52   :  { %3898 = vmatpush3.bf16.msra.mxu0 %v4393_v30  ;;  %v4441_v30 = vld [vmem:[#allocation5 + $0x250] sm:$0xff]   ;;  %v4448_v39 = vld [vmem:[#allocation5 + $0x228] sm:$0xff]   ;;  %v3590_v48 = vld.sshfl [vmem:[#allocation2 + $0x8] sm:$0x1 pattern:$0x75316420] }
  0x53   :  { %3899 = vmatprep.subr.bf16.mxu0 %v4396_v33  ;;  %v4444_v33 = vld [vmem:[#allocation5 + $0x258] sm:$0xff]  }
  0x54   :  { %3920 = vmatpush3.bf16.msra.mxu1 %v4395_v32  ;;  %v4442_v32 = vld [vmem:[#allocation5 + $0x218] sm:$0xff]  }
  0x55   :  { %3921 = vmatprep.subr.bf16.mxu1 %v4398_v36  ;;  %v4445_v36 = vld [vmem:[#allocation5 + $0x220] sm:$0xff]  }
  0x56   :  { %3900 = vmatpush3.bf16.msra.mxu0 %v4397_v35  ;;  %v4446_v35 = vld [vmem:[#allocation5 + $0x2a0] sm:$0xff]  }
  0x57   :  { %3929 = vmatprep.subr.bf16.mxu0 %v4401_v41  ;;  %v938_v41 = vld [vmem:[#allocation2 + $0x9] sm:$0xff] }
  0x58   :  { %3922 = vmatpush3.bf16.msra.mxu1 %v4400_v40  ;;  %v4450_v40 = vld [vmem:[#allocation5 + $0x268] sm:$0xff]   ;;  %v1095_v44 = vcombine.high %v938_v41, %v938_v41 }
  0x59   :  { %3951 = vmatprep.subr.bf16.mxu1 %v4403_v45  ;;  %754 = vmatmul.mubr.bf16.vlgmr.msra.gmra.mrb[0].mxu0 %v240_v43  ;;  %v1102_v43 = vrot.slane %v938_v41, %v4842_v34  ;;  %v4451_v45 = vld [vmem:[#allocation5 + $0x230] sm:$0xff]   ;;  %v4499_v41 = vld [vmem:[#allocation5 + $0x418] sm:$0xff]  }
  0x5a   :  { %3930 = vmatpush3.bf16.msra.mxu0 %v4402_v47  ;;  %833 = vmatprep.mubr.bf16.mxu0 %v261_v53  ;;  %v4453_v47 = vld [vmem:[#allocation5 + $0x270] sm:$0xff]   ;;  %v4457_v53 = vld [vmem:[#allocation5 + $0x300] sm:$0xff]  }
  0x5b   :  { %794 = vmatmul.mubr.bf16.vlgmr.msra.gmra.mrb[0].mxu1 %v262_v49  ;;  %3931 = vmatprep.subr.bf16.mxu0 %v4405_v50  ;;  %v1110_v46 = vcombine.high %v1102_v43, %v1102_v43  ;;  %v4866_v49 = vrot.slane %v1095_v44, %v4842_v34  ;;  %v4455_v50 = vld [vmem:[#allocation5 + $0x2b8] sm:$0xff]   ;;  %v4502_v44 = vld [vmem:[#allocation5 + $0x420] sm:$0xff]  }
  0x5c   :  { %3952 = vmatpush3.bf16.msra.mxu1 %v4404_v52  ;;  %873 = vmatprep.mubr.bf16.mxu1 %v265_v56  ;;  %v4454_v52 = vld [vmem:[#allocation5 + $0x238] sm:$0xff]   ;;  %v279_v56 = vrot.slane %v3590_v48, %v4842_v34  ;;  %v4504_v48 = vld [vmem:[#allocation5 + $0x460] sm:$0xff]  }
  0x5d   :  { %3953 = vmatprep.subr.bf16.mxu1 %v4407_v54  ;;  %v1132_v51 = vrot.slane %v1110_v46, %v4842_v34  ;;  %v4456_v54 = vld [vmem:[#allocation5 + $0x278] sm:$0xff]   ;;  %v4503_v46 = vld [vmem:[#allocation5 + $0x3e0] sm:$0xff]  }
  0x5e   :  { %3932 = vmatpush3.bf16.msra.mxu0 %v4406_v55  ;;  %v1111_v55 = vcombine.high %v4866_v49, %v4866_v49 }
  0x5f   :  { %3933 = vmatprep.subr.bf16.mxu0 %v4409_v57  ;;  %v4459_v57 = vld [vmem:[#allocation5 + $0x380] sm:$0xff]  }
  0x60   :  { %3954 = vmatpush3.bf16.msra.mxu1 %v4408_v58  ;;  %v4458_v58 = vld [vmem:[#allocation5 + $0x2c0] sm:$0xff]  }
  0x61   :  { %3955 = vmatprep.subr.bf16.mxu1 %v4411_v59  ;;  %v1142_v59 = vcombine.high %v1132_v51, %v1132_v51 }
  0x62   :  { %3934 = vmatpush3.bf16.msra.mxu0 %v4410_v60  ;;  %v4874_v60 = vrot.slane %v1102_v43, %v4842_v34  ;;  %v4500_v43 = vld [vmem:[#allocation5 + $0x3d8] sm:$0xff]  }
  0x63   :  { %3935 = vmatprep.subr.bf16.mxu0 %v4413_v61  ;;  %v4461_v61 = vld [vmem:[#allocation5 + $0x308] sm:$0xff]  }
  0x64   :  { %3956 = vmatpush3.bf16.msra.mxu1 %v4412_v62  ;;  %v4460_v62 = vld [vmem:[#allocation5 + $0x340] sm:$0xff]  }
  0x65   :  { %3957 = vmatprep.subr.bf16.mxu1 %v4415_v63  ;;  %v4877_v63 = vrot.slane %v1111_v55, %v4842_v34  ;;  %v4512_v55 = vld [vmem:[#allocation5 + $0x3f8] sm:$0xff]  }
  0x66   :  { %3936 = vmatpush3.bf16.msra.mxu0 %v4414_v0  ;;  %v4463_v0 = vld [vmem:[#allocation5 + $0x388] sm:$0xff]  }
  0x67   :  { %3937 = vmatprep.subr.bf16.mxu0 %v4417_v1  ;;  %v4462_v1 = vld [vmem:[#allocation5 + $0x2c8] sm:$0xff]  }
  0x68   :  { %3958 = vmatpush3.bf16.msra.mxu1 %v4416_v2  ;;  %v4465_v2 = vld [vmem:[#allocation5 + $0x310] sm:$0xff]  }
  0x69   :  { %3959 = vmatprep.subr.bf16.mxu1 %v4419_v3  ;;  %v4464_v3 = vld [vmem:[#allocation5 + $0x348] sm:$0xff]  }
  0x6a   :  { %3938 = vmatpush3.bf16.msra.mxu0 %v4418_v4  ;;  %v4467_v4 = vld [vmem:[#allocation5 + $0x390] sm:$0xff]  }
  0x6b   :  { %3939 = vmatprep.subr.bf16.mxu0 %v4421_v5  ;;  %v4466_v5 = vld [vmem:[#allocation5 + $0x2d0] sm:$0xff]  }
  0x6c   :  { %3960 = vmatpush3.bf16.msra.mxu1 %v4420_v6  ;;  %v4469_v6 = vld [vmem:[#allocation5 + $0x318] sm:$0xff]  }
  0x6d   :  { %3961 = vmatprep.subr.bf16.mxu1 %v4423_v7  ;;  %v4468_v7 = vld [vmem:[#allocation5 + $0x350] sm:$0xff]  }
  0x6e   :  { %3940 = vmatpush3.bf16.msra.mxu0 %v4422_v8  ;;  %v4471_v8 = vld [vmem:[#allocation5 + $0x398] sm:$0xff]  }
  0x6f   :  { %3941 = vmatprep.subr.bf16.mxu0 %v4425_v9  ;;  %v4470_v9 = vld [vmem:[#allocation5 + $0x2d8] sm:$0xff]  }
  0x70   :  { %3962 = vmatpush3.bf16.msra.mxu1 %v4424_v10  ;;  %v4473_v10 = vld [vmem:[#allocation5 + $0x320] sm:$0xff]  }
  0x71   :  { %3963 = vmatprep.subr.bf16.mxu1 %v4427_v11  ;;  %v4472_v11 = vld [vmem:[#allocation5 + $0x358] sm:$0xff]  }
  0x72   :  { %3942 = vmatpush3.bf16.msra.mxu0 %v4426_v12  ;;  %v4475_v12 = vld [vmem:[#allocation5 + $0x3a0] sm:$0xff]  }
  0x73   :  { %3943 = vmatprep.subr.bf16.mxu0 %v4429_v13  ;;  %v4474_v13 = vld [vmem:[#allocation5 + $0x2e0] sm:$0xff]  }
  0x74   :  { %3964 = vmatpush3.bf16.msra.mxu1 %v4428_v14  ;;  %v4477_v14 = vld [vmem:[#allocation5 + $0x328] sm:$0xff]  }
  0x75   :  { %3965 = vmatprep.subr.bf16.mxu1 %v4431_v15  ;;  %v4476_v15 = vld [vmem:[#allocation5 + $0x360] sm:$0xff]  }
  0x76   :  { %3944 = vmatpush3.bf16.msra.mxu0 %v4430_v16  ;;  %v4479_v16 = vld [vmem:[#allocation5 + $0x3a8] sm:$0xff]  }
  0x77   :  { %4273 = vmatprep.subr.bf16.mxu0 %v4780_v22 }
  0x78   :  { %3966 = vmatpush3.bf16.msra.mxu1 %v4432_v18  ;;  %v4481_v18 = vld [vmem:[#allocation5 + $0x330] sm:$0xff]  }
  0x79   :  { %834 = vmatmul.mubr.bf16.vlgmr.msra.gmra.mrb[4].mxu0 %v247_v17  ;;  %3982 = vmatprep.subr.bf16.mxu1 %v4434_v19  ;;  %v4478_v17 = vld [vmem:[#allocation5 + $0x2e8] sm:$0xff]  }
  0x7a   :  { %4274 = vmatpush3.bf16.msra.mxu0 %v4433_v20  ;;  %4289 = vmatprep.mubr.msk.bf16.mxu0 %vm4781_vm0, %v4780_v22  ;;  %v4480_v19 = vld [vmem:[#allocation5 + $0x368] sm:$0xff]   ;;  %v4483_v20 = vld [vmem:[#allocation5 + $0x3b0] sm:$0xff]  }
  0x7b   :  { %874 = vmatmul.mubr.bf16.vlgmr.msra.gmra.mrb[4].mxu1 %v263_v23  ;;  %4275 = vmatprep.subr.bf16.mxu0 %v4780_v22  ;;  %v4482_v23 = vld [vmem:[#allocation5 + $0x2f0] sm:$0xff]  }
  0x7c   :  { %3983 = vmatpush3.bf16.msra.mxu1 %v4435_v24  ;;  %1631 = vmatprep.mubr.bf16.mxu1 %v1132_v51  ;;  %v4485_v24 = vld [vmem:[#allocation5 + $0x338] sm:$0xff]   ;;  %v4507_v51 = vld [vmem:[#allocation5 + $0x468] sm:$0xff]  }
  0x7d   :  { %3984 = vmatprep.subr.bf16.mxu1 %v4437_v25  ;;  %v4484_v25 = vld [vmem:[#allocation5 + $0x370] sm:$0xff]  }
  0x7e   :  { %4276 = vmatpush3.bf16.msra.mxu0 %v4436_v26  ;;  %v4487_v26 = vld [vmem:[#allocation5 + $0x3b8] sm:$0xff]  }
  0x7f   :  { %4277 = vmatprep.subr.bf16.mxu0 %v4780_v22 }
  0x80   :  { %3985 = vmatpush3.bf16.msra.mxu1 %v4438_v27  ;;  %v4486_v27 = vld [vmem:[#allocation5 + $0x2f8] sm:$0xff]  }
  0x81   :  { %3986 = vmatprep.subr.bf16.mxu1 %v4440_v28  ;;  %v4489_v28 = vld [vmem:[#allocation5 + $0x400] sm:$0xff]  }
  0x82   :  { %4278 = vmatpush3.bf16.msra.mxu0 %v4439_v29  ;;  %v4488_v29 = vld [vmem:[#allocation5 + $0x378] sm:$0xff]  }
  0x83   :  { %4279 = vmatprep.subr.bf16.mxu0 %v4780_v22 }
  0x84   :  { %3987 = vmatpush3.bf16.msra.mxu1 %v4441_v30  ;;  %v1140_v30 = vcombine.high %v4874_v60, %v4874_v60 }
  0x85   :  { %3988 = vmatprep.subr.bf16.mxu1 %v4443_v31  ;;  %v4491_v31 = vld [vmem:[#allocation5 + $0x3c0] sm:$0xff]  }
  0x86   :  { %4280 = vmatpush3.bf16.msra.mxu0 %v4442_v32  ;;  %v1143_v32 = vcombine.high %v4877_v63, %v4877_v63 }
  0x87   :  { %4281 = vmatprep.subr.bf16.mxu0 %v4780_v22 }
  0x88   :  { %3989 = vmatpush3.bf16.msra.mxu1 %v4444_v33  ;;  %v4887_v33 = vrot.slane %v4866_v49, %v4842_v34  ;;  %v4506_v49 = vld [vmem:[#allocation5 + $0x3e8] sm:$0xff]  }
  0x89   :  { %3990 = vmatprep.subr.bf16.mxu1 %v4446_v35  ;;  %v4493_v35 = vld [vmem:[#allocation5 + $0x408] sm:$0xff]  }
  0x8a   :  { %4282 = vmatpush3.bf16.msra.mxu0 %v4445_v36  ;;  %v4492_v36 = vld [vmem:[#allocation5 + $0x440] sm:$0xff]  }
  0x8b   :  { %4283 = vmatprep.subr.bf16.mxu0 %v4780_v22 }
  0x8c   :  { %3991 = vmatpush3.bf16.msra.mxu1 %v4447_v37  ;;  %v4494_v37 = vld [vmem:[#allocation5 + $0x3c8] sm:$0xff]  }
  0x8d   :  { %3992 = vmatprep.subr.bf16.mxu1 %v4449_v38  ;;  %v4496_v38 = vld [vmem:[#allocation5 + $0x410] sm:$0xff]  }
  0x8e   :  { %4284 = vmatpush3.bf16.msra.mxu0 %v4448_v39  ;;  %v4495_v39 = vld [vmem:[#allocation5 + $0x448] sm:$0xff]  }
  0x8f   :  { %4285 = vmatprep.subr.bf16.mxu0 %v4780_v22 }
  0x90   :  { %3993 = vmatpush3.bf16.msra.mxu1 %v4450_v40  ;;  %v4497_v40 = vld [vmem:[#allocation5 + $0x3d0] sm:$0xff]  }
  0x91   :  { %3994 = vmatprep.subr.bf16.mxu1 %v4452_v42  ;;  %v4498_v42 = vld [vmem:[#allocation5 + $0x450] sm:$0xff]  }
  0x92   :  { %4286 = vmatpush3.bf16.msra.mxu0 %v4451_v45  ;;  %v4501_v45 = vld [vmem:[#allocation5 + $0x458] sm:$0xff]  }
  0x93   :  { %4287 = vmatprep.subr.bf16.mxu0 %v4780_v22 }
  0x94   :  { %3995 = vmatpush3.bf16.msra.mxu1 %v4453_v47  ;;  %v4505_v47 = vld [vmem:[#allocation5 + $0x428] sm:$0xff]  }
  0x95   :  { %3996 = vmatprep.subr.bf16.mxu1 %v4455_v50  ;;  %v4508_v50 = vld [vmem:[#allocation5 + $0x430] sm:$0xff]  }
  0x96   :  { %4288 = vmatpush3.bf16.msra.mxu0 %v4454_v52  ;;  %v4509_v52 = vld [vmem:[#allocation5 + $0x3f0] sm:$0xff]  }
  0x97   :  { %4004 = vmatprep.subr.bf16.mxu0 %v4457_v53  ;;  %v4511_v53 = vld [vmem:[#allocation5 + $0x438] sm:$0xff]  }
  0x98   :  { %3997 = vmatpush3.bf16.msra.mxu1 %v4456_v54  ;;  %v4510_v54 = vld [vmem:[#allocation5 + $0x470] sm:$0xff]  }
  0x99   :  { %4290 = vmatmul.mubr.bf16.vlgmr.msra.gmra.mrb[8].mxu0 %v279_v56  ;;  %4026 = vmatprep.subr.bf16.mxu1 %v4459_v57  ;;  %v3664_v56 = vld.sshfl [vmem:[#allocation2 + $0x11] sm:$0x1 pattern:$0x75316420]  ;;  %v4514_v57 = vld [vmem:[#allocation5 + $0x4c0] sm:$0xff]  }
  0x9a   :  { %4005 = vmatpush3.bf16.msra.mxu0 %v4458_v58  ;;  %1671 = vmatprep.mubr.bf16.mxu0 %v1142_v59  ;;  %v4513_v58 = vld [vmem:[#allocation5 + $0x478] sm:$0xff]   ;;  %v1141_v59 = vcombine.high %v4887_v33, %v4887_v33 }
  0x9b   :  { %1632 = vmatmul.mubr.bf16.vlgmr.msra.gmra.mrb[8].mxu1 %v4874_v60  ;;  %4006 = vmatprep.subr.bf16.mxu0 %v4461_v61  ;;  %v4516_v60 = vld [vmem:[#allocation5 + $0x540] sm:$0xff]  }
  0x9c   :  { %4027 = vmatpush3.bf16.msra.mxu1 %v4460_v62  ;;  %1711 = vmatprep.mubr.bf16.mxu1 %v4877_v63  ;;  %v4515_v61 = vld [vmem:[#allocation5 + $0x480] sm:$0xff]   ;;  %v1157_v62 = vrot.slane %v3664_v56, %v4842_v34  ;;  %v4518_v63 = vld [vmem:[#allocation5 + $0x4c8] sm:$0xff]   ;;  %v4560_v56 = vld [vmem:[#allocation5 + $0x658] sm:$0xff]  }
  0x9d   :  { %4028 = vmatprep.subr.bf16.mxu1 %v4463_v0  ;;  %v4517_v0 = vld [vmem:[#allocation5 + $0x500] sm:$0xff]  }
  0x9e   :  { %4007 = vmatpush3.bf16.msra.mxu0 %v4462_v1  ;;  %v4520_v1 = vld [vmem:[#allocation5 + $0x548] sm:$0xff]  }
  0x9f   :  { %4008 = vmatprep.subr.bf16.mxu0 %v4465_v2  ;;  %v4519_v2 = vld [vmem:[#allocation5 + $0x488] sm:$0xff]  }
  0xa0   :  { %4029 = vmatpush3.bf16.msra.mxu1 %v4464_v3  ;;  %v4522_v3 = vld [vmem:[#allocation5 + $0x4d0] sm:$0xff]  }
  0xa1   :  { %4030 = vmatprep.subr.bf16.mxu1 %v4467_v4  ;;  %v4521_v4 = vld [vmem:[#allocation5 + $0x508] sm:$0xff]  }
  0xa2   :  { %4009 = vmatpush3.bf16.msra.mxu0 %v4466_v5  ;;  %v4524_v5 = vld [vmem:[#allocation5 + $0x550] sm:$0xff]  }
  0xa3   :  { %4010 = vmatprep.subr.bf16.mxu0 %v4469_v6  ;;  %v4523_v6 = vld [vmem:[#allocation5 + $0x490] sm:$0xff]  }
  0xa4   :  { %4031 = vmatpush3.bf16.msra.mxu1 %v4468_v7  ;;  %v4526_v7 = vld [vmem:[#allocation5 + $0x4d8] sm:$0xff]  }
  0xa5   :  { %4032 = vmatprep.subr.bf16.mxu1 %v4471_v8  ;;  %v4525_v8 = vld [vmem:[#allocation5 + $0x510] sm:$0xff]  }
  0xa6   :  { %4011 = vmatpush3.bf16.msra.mxu0 %v4470_v9  ;;  %v4528_v9 = vld [vmem:[#allocation5 + $0x558] sm:$0xff]  }
  0xa7   :  { %4012 = vmatprep.subr.bf16.mxu0 %v4473_v10  ;;  %v4527_v10 = vld [vmem:[#allocation5 + $0x498] sm:$0xff]  }
  0xa8   :  { %4033 = vmatpush3.bf16.msra.mxu1 %v4472_v11  ;;  %v1816_v11 = vld [vmem:[#allocation2 + $0x12] sm:$0xff] }
  0xa9   :  { %4034 = vmatprep.subr.bf16.mxu1 %v4475_v12  ;;  %v4530_v12 = vld [vmem:[#allocation5 + $0x4e0] sm:$0xff]  }
  0xaa   :  { %4013 = vmatpush3.bf16.msra.mxu0 %v4474_v13  ;;  %v1980_v13 = vrot.slane %v1816_v11, %v4842_v34 }
  0xab   :  { %4014 = vmatprep.subr.bf16.mxu0 %v4477_v14  ;;  %v4529_v14 = vld [vmem:[#allocation5 + $0x518] sm:$0xff]  }
  0xac   :  { %4035 = vmatpush3.bf16.msra.mxu1 %v4476_v15  ;;  %v4532_v15 = vld [vmem:[#allocation5 + $0x560] sm:$0xff]  }
  0xad   :  { %4036 = vmatprep.subr.bf16.mxu1 %v4479_v16  ;;  %v1988_v16 = vcombine.high %v1980_v13, %v1980_v13 }
  0xae   :  { %4015 = vmatpush3.bf16.msra.mxu0 %v4478_v17  ;;  %v4531_v17 = vld [vmem:[#allocation5 + $0x4a0] sm:$0xff]  }
  0xaf   :  { %4016 = vmatprep.subr.bf16.mxu0 %v4481_v18  ;;  %v4534_v18 = vld [vmem:[#allocation5 + $0x4e8] sm:$0xff]  }
  0xb0   :  { %4037 = vmatpush3.bf16.msra.mxu1 %v4480_v19  ;;  %v2010_v19 = vrot.slane %v1988_v16, %v4842_v34  ;;  %v4583_v16 = vld [vmem:[#allocation5 + $0x708] sm:$0xff]  }
  0xb1   :  { %4038 = vmatprep.subr.bf16.mxu1 %v4483_v20  ;;  %v4533_v20 = vld [vmem:[#allocation5 + $0x520] sm:$0xff]  }
  0xb2   :  { %4017 = vmatpush3.bf16.msra.mxu0 %v4482_v23  ;;  %v1973_v23 = vcombine.high %v1816_v11, %v1816_v11  ;;  %v4578_v11 = vld [vmem:[#allocation5 + $0x638] sm:$0xff]  }
  0xb3   :  { %4018 = vmatprep.subr.bf16.mxu0 %v4485_v24  ;;  %v4536_v24 = vld [vmem:[#allocation5 + $0x568] sm:$0xff]  }
  0xb4   :  { %4039 = vmatpush3.bf16.msra.mxu1 %v4484_v25  ;;  %v2020_v25 = vcombine.high %v2010_v19, %v2010_v19 }
  0xb5   :  { %4040 = vmatprep.subr.bf16.mxu1 %v4487_v26  ;;  %v4535_v26 = vld [vmem:[#allocation5 + $0x4a8] sm:$0xff]  }
  0xb6   :  { %4019 = vmatpush3.bf16.msra.mxu0 %v4486_v27  ;;  %v4538_v27 = vld [vmem:[#allocation5 + $0x4f0] sm:$0xff]  }
  0xb7   :  { %4048 = vmatprep.subr.bf16.mxu0 %v4489_v28  ;;  %v4537_v28 = vld [vmem:[#allocation5 + $0x528] sm:$0xff]  }
  0xb8   :  { %4041 = vmatpush3.bf16.msra.mxu1 %v4488_v29  ;;  %v4906_v29 = vrot.slane %v1973_v23, %v4842_v34  ;;  %v2694_v23 = vld [vmem:[#allocation2 + $0x1b] sm:$0xff] }
  0xb9   :  { %1672 = vmatmul.mubr.bf16.vlgmr.msra.gmra.mrb[12].mxu0 %v1140_v30  ;;  %4293 = vmatprep.subr.bf16.mxu1 %v4780_v22  ;;  %v4540_v30 = vld [vmem:[#allocation5 + $0x570] sm:$0xff]  }
  0xba   :  { %4049 = vmatpush3.bf16.msra.mxu0 %v4491_v31  ;;  %1751 = vmatprep.mubr.bf16.mxu0 %v1143_v32  ;;  %v4539_v31 = vld [vmem:[#allocation5 + $0x4b0] sm:$0xff]   ;;  %v4542_v32 = vld [vmem:[#allocation5 + $0x4f8] sm:$0xff]  }
  0xbb   :  { %1712 = vmatmul.mubr.bf16.vlgmr.msra.gmra.mrb[12].mxu1 %v4887_v33  ;;  %4050 = vmatprep.subr.bf16.mxu0 %v4493_v35  ;;  %v4541_v33 = vld [vmem:[#allocation5 + $0x530] sm:$0xff]   ;;  %v1989_v35 = vcombine.high %v4906_v29, %v4906_v29 }
  0xbc   :  { %4294 = vmatpush3.bf16.msra.mxu1 %v4492_v36  ;;  %4309 = vmatprep.mubr.msk.bf16.mxu1 %vm4781_vm0, %v4780_v22  ;;  %v4544_v36 = vld [vmem:[#allocation5 + $0x578] sm:$0xff]  }
  0xbd   :  { %4295 = vmatprep.subr.bf16.mxu1 %v4780_v22 }
  0xbe   :  { %4051 = vmatpush3.bf16.msra.mxu0 %v4494_v37  ;;  %v4543_v37 = vld [vmem:[#allocation5 + $0x4b8] sm:$0xff]  }
  0xbf   :  { %4052 = vmatprep.subr.bf16.mxu0 %v4496_v38  ;;  %v1996_v38 = vrot.slane %v1980_v13, %v4842_v34  ;;  %v4579_v13 = vld [vmem:[#allocation5 + $0x680] sm:$0xff]  }
  0xc0   :  { %4296 = vmatpush3.bf16.msra.mxu1 %v4495_v39  ;;  %v4546_v39 = vld [vmem:[#allocation5 + $0x5c0] sm:$0xff]  }
  0xc1   :  { %4297 = vmatprep.subr.bf16.mxu1 %v4780_v22 }
  0xc2   :  { %4053 = vmatpush3.bf16.msra.mxu0 %v4497_v40  ;;  %v4545_v40 = vld [vmem:[#allocation5 + $0x538] sm:$0xff]  }
  0xc3   :  { %4054 = vmatprep.subr.bf16.mxu0 %v4499_v41  ;;  %v2017_v41 = vrot.slane %v1989_v35, %v4842_v34  ;;  %v4595_v35 = vld [vmem:[#allocation5 + $0x728] sm:$0xff]  }
  0xc4   :  { %4298 = vmatpush3.bf16.msra.mxu1 %v4498_v42  ;;  %v4548_v42 = vld [vmem:[#allocation5 + $0x640] sm:$0xff]  }
  0xc5   :  { %4299 = vmatprep.subr.bf16.mxu1 %v4780_v22 }
  0xc6   :  { %4055 = vmatpush3.bf16.msra.mxu0 %v4500_v43  ;;  %v4547_v43 = vld [vmem:[#allocation5 + $0x580] sm:$0xff]  }
  0xc7   :  { %4056 = vmatprep.subr.bf16.mxu0 %v4502_v44  ;;  %v2018_v44 = vcombine.high %v1996_v38, %v1996_v38 }
  0xc8   :  { %4300 = vmatpush3.bf16.msra.mxu1 %v4501_v45  ;;  %v4550_v45 = vld [vmem:[#allocation5 + $0x5c8] sm:$0xff]  }
  0xc9   :  { %4301 = vmatprep.subr.bf16.mxu1 %v4780_v22 }
  0xca   :  { %4057 = vmatpush3.bf16.msra.mxu0 %v4503_v46  ;;  %v4549_v46 = vld [vmem:[#allocation5 + $0x600] sm:$0xff]  }
  0xcb   :  { %4058 = vmatprep.subr.bf16.mxu0 %v4505_v47  ;;  %v2021_v47 = vcombine.high %v2017_v41, %v2017_v41 }
  0xcc   :  { %4302 = vmatpush3.bf16.msra.mxu1 %v4504_v48  ;;  %v4552_v48 = vld [vmem:[#allocation5 + $0x648] sm:$0xff]  }
  0xcd   :  { %4303 = vmatprep.subr.bf16.mxu1 %v4780_v22 }
  0xce   :  { %4059 = vmatpush3.bf16.msra.mxu0 %v4506_v49  ;;  %v4551_v49 = vld [vmem:[#allocation5 + $0x588] sm:$0xff]  }
  0xcf   :  { %4060 = vmatprep.subr.bf16.mxu0 %v4508_v50  ;;  %v4554_v50 = vld [vmem:[#allocation5 + $0x5d0] sm:$0xff]  }
  0xd0   :  { %4304 = vmatpush3.bf16.msra.mxu1 %v4507_v51  ;;  %v4553_v51 = vld [vmem:[#allocation5 + $0x608] sm:$0xff]  }
  0xd1   :  { %4305 = vmatprep.subr.bf16.mxu1 %v4780_v22 }
  0xd2   :  { %4061 = vmatpush3.bf16.msra.mxu0 %v4509_v52  ;;  %v4556_v52 = vld [vmem:[#allocation5 + $0x650] sm:$0xff]  }
  0xd3   :  { %4062 = vmatprep.subr.bf16.mxu0 %v4511_v53  ;;  %v4555_v53 = vld [vmem:[#allocation5 + $0x590] sm:$0xff]  }
  0xd4   :  { %4306 = vmatpush3.bf16.msra.mxu1 %v4510_v54  ;;  %v4558_v54 = vld [vmem:[#allocation5 + $0x5d8] sm:$0xff]  }
  0xd5   :  { %4307 = vmatprep.subr.bf16.mxu1 %v4780_v22 }
  0xd6   :  { %4063 = vmatpush3.bf16.msra.mxu0 %v4512_v55  ;;  %v4557_v55 = vld [vmem:[#allocation5 + $0x610] sm:$0xff]  }
  0xd7   :  { %4079 = vmatprep.subr.bf16.mxu0 %v4514_v57  ;;  %v4559_v57 = vld [vmem:[#allocation5 + $0x598] sm:$0xff]  }
  0xd8   :  { %4308 = vmatpush3.bf16.msra.mxu1 %v4513_v58  ;;  %v4562_v58 = vld [vmem:[#allocation5 + $0x5e0] sm:$0xff]  }
  0xd9   :  { %1752 = vmatmul.mubr.bf16.vlgmr.msra.gmra.mrb[16].mxu0 %v1141_v59  ;;  %4101 = vmatprep.subr.bf16.mxu1 %v4516_v60  ;;  %v4561_v59 = vld [vmem:[#allocation5 + $0x618] sm:$0xff]   ;;  %v4564_v60 = vld [vmem:[#allocation5 + $0x660] sm:$0xff]  }
  0xda   :  { %4080 = vmatpush3.bf16.msra.mxu0 %v4515_v61  ;;  %2509 = vmatprep.mubr.bf16.mxu0 %v2010_v19  ;;  %v4563_v61 = vld [vmem:[#allocation5 + $0x5a0] sm:$0xff]   ;;  %v4586_v19 = vld [vmem:[#allocation5 + $0x710] sm:$0xff]  }
  0xdb   :  { %4310 = vmatmul.mubr.bf16.vlgmr.msra.gmra.mrb[16].mxu1 %v1157_v62  ;;  %4081 = vmatprep.subr.bf16.mxu0 %v4518_v63  ;;  %v4566_v62 = vld [vmem:[#allocation5 + $0x5e8] sm:$0xff]   ;;  %v4565_v63 = vld [vmem:[#allocation5 + $0x620] sm:$0xff]  }
  0xdc   :  { %4102 = vmatpush3.bf16.msra.mxu1 %v4517_v0  ;;  %2549 = vmatprep.mubr.bf16.mxu1 %v2020_v25  ;;  %v4568_v0 = vld [vmem:[#allocation5 + $0x668] sm:$0xff]   ;;  %v4587_v25 = vld [vmem:[#allocation5 + $0x6d0] sm:$0xff]  }
  0xdd   :  { %4103 = vmatprep.subr.bf16.mxu1 %v4520_v1  ;;  %v4567_v1 = vld [vmem:[#allocation5 + $0x5a8] sm:$0xff]  }
  0xde   :  { %4082 = vmatpush3.bf16.msra.mxu0 %v4519_v2  ;;  %v4570_v2 = vld [vmem:[#allocation5 + $0x5f0] sm:$0xff]  }
  0xdf   :  { %4083 = vmatprep.subr.bf16.mxu0 %v4522_v3  ;;  %v4569_v3 = vld [vmem:[#allocation5 + $0x628] sm:$0xff]  }
  0xe0   :  { %4104 = vmatpush3.bf16.msra.mxu1 %v4521_v4  ;;  %v4572_v4 = vld [vmem:[#allocation5 + $0x670] sm:$0xff]  }
  0xe1   :  { %4105 = vmatprep.subr.bf16.mxu1 %v4524_v5  ;;  %v4571_v5 = vld [vmem:[#allocation5 + $0x5b0] sm:$0xff]  }
  0xe2   :  { %4084 = vmatpush3.bf16.msra.mxu0 %v4523_v6  ;;  %v4574_v6 = vld [vmem:[#allocation5 + $0x5f8] sm:$0xff]  }
  0xe3   :  { %4085 = vmatprep.subr.bf16.mxu0 %v4526_v7  ;;  %v4573_v7 = vld [vmem:[#allocation5 + $0x630] sm:$0xff]  }
  0xe4   :  { %4106 = vmatpush3.bf16.msra.mxu1 %v4525_v8  ;;  %v4576_v8 = vld [vmem:[#allocation5 + $0x678] sm:$0xff]  }
  0xe5   :  { %4107 = vmatprep.subr.bf16.mxu1 %v4528_v9  ;;  %v4575_v9 = vld [vmem:[#allocation5 + $0x5b8] sm:$0xff]  }
  0xe6   :  { %4086 = vmatpush3.bf16.msra.mxu0 %v4527_v10  ;;  %v2003_v10 = vrot.slane %v4906_v29, %v4842_v34 }
  0xe7   :  { %4087 = vmatprep.subr.bf16.mxu0 %v4530_v12  ;;  %v4580_v12 = vld [vmem:[#allocation5 + $0x700] sm:$0xff]  }
  0xe8   :  { %4108 = vmatpush3.bf16.msra.mxu1 %v4529_v14  ;;  %v2019_v14 = vcombine.high %v2003_v10, %v2003_v10 }
  0xe9   :  { %4109 = vmatprep.subr.bf16.mxu1 %v4532_v15  ;;  %v4581_v15 = vld [vmem:[#allocation5 + $0x6c0] sm:$0xff]  }
  0xea   :  { %4088 = vmatpush3.bf16.msra.mxu0 %v4531_v17  ;;  %v4582_v17 = vld [vmem:[#allocation5 + $0x688] sm:$0xff]  }
  0xeb   :  { %4089 = vmatprep.subr.bf16.mxu0 %v4534_v18  ;;  %v4584_v18 = vld [vmem:[#allocation5 + $0x6c8] sm:$0xff]  }
  0xec   :  { %4110 = vmatpush3.bf16.msra.mxu1 %v4533_v20  ;;  %v4585_v20 = vld [vmem:[#allocation5 + $0x690] sm:$0xff]  }
  0xed   :  { %4111 = vmatprep.subr.bf16.mxu1 %v4536_v24  ;;  %v4920_v24 = vrot.slane %v2694_v23, %v4842_v34 }
  0xee   :  { %4090 = vmatpush3.bf16.msra.mxu0 %v4535_v26  ;;  %v4589_v26 = vld [vmem:[#allocation5 + $0x718] sm:$0xff]  }
  0xef   :  { %4091 = vmatprep.subr.bf16.mxu0 %v4538_v27  ;;  %v2866_v27 = vcombine.high %v4920_v24, %v4920_v24 }
  0xf0   :  { %4112 = vmatpush3.bf16.msra.mxu1 %v4537_v28  ;;  %v4588_v28 = vld [vmem:[#allocation5 + $0x698] sm:$0xff]  }
  0xf1   :  { %4113 = vmatprep.subr.bf16.mxu1 %v4540_v30  ;;  %v4926_v29 = vrot.slane %v2866_v27, %v4842_v34  ;;  %v4590_v30 = vld [vmem:[#allocation5 + $0x6d8] sm:$0xff]  }
  0xf2   :  { %4092 = vmatpush3.bf16.msra.mxu0 %v4539_v31  ;;  %v4592_v31 = vld [vmem:[#allocation5 + $0x720] sm:$0xff]  }
  0xf3   :  { %4093 = vmatprep.subr.bf16.mxu0 %v4542_v32  ;;  %v4591_v32 = vld [vmem:[#allocation5 + $0x6a0] sm:$0xff]  }
  0xf4   :  { %4114 = vmatpush3.bf16.msra.mxu1 %v4541_v33  ;;  %v4593_v33 = vld [vmem:[#allocation5 + $0x6e0] sm:$0xff]  }
  0xf5   :  { %4115 = vmatprep.subr.bf16.mxu1 %v4544_v36  ;;  %v4594_v36 = vld [vmem:[#allocation5 + $0x6a8] sm:$0xff]  }
  0xf6   :  { %4094 = vmatpush3.bf16.msra.mxu0 %v4543_v37  ;;  %v3589_v37 = vld [vmem:[#allocation7] ss:$0 sm:$0xff] }
  0xf7   :  { %4123 = vmatprep.subr.bf16.mxu0 %v4546_v39 }
  0xf8   :  { %4116 = vmatpush3.bf16.msra.mxu1 %v4545_v40  ;;  %v4597_v40 = vld [vmem:[#allocation5 + $0x6b0] sm:$0xff]  }
  0xf9   :  { %2510 = vmatmul.mubr.bf16.vlgmr.msra.gmra.mrb[20].mxu0 %v1996_v38  ;;  %4145 = vmatprep.subr.bf16.mxu1 %v4548_v42  ;;  %v4596_v38 = vld [vmem:[#allocation5 + $0x6e8] sm:$0xff]  }
  0xfa   :  { %4124 = vmatpush3.bf16.msra.mxu0 %v4547_v43  ;;  %2589 = vmatprep.mubr.bf16.mxu0 %v2017_v41  ;;  %v2851_v41 = vcombine.high %v2694_v23, %v2694_v23  ;;  %v4598_v43 = vld [vmem:[#allocation5 + $0x730] sm:$0xff]   ;;  %v4622_v23 = vld [vmem:[#allocation5 + $0x7e0] sm:$0xff]  }
  0xfb   :  { %2550 = vmatmul.mubr.bf16.vlgmr.msra.gmra.mrb[20].mxu1 %v2018_v44  ;;  %4125 = vmatprep.subr.bf16.mxu0 %v4550_v45 }
  0xfc   :  { %4146 = vmatpush3.bf16.msra.mxu1 %v4549_v46  ;;  %2629 = vmatprep.mubr.bf16.mxu1 %v2021_v47 }
  0xfd   :  { %4147 = vmatprep.subr.bf16.mxu1 %v4552_v48 }
  0xfe   :  { %4126 = vmatpush3.bf16.msra.mxu0 %v4551_v49  ;;  %v4599_v49 = vld [vmem:[#allocation5 + $0x6f0] sm:$0xff]  }
  0xff   :  { %4127 = vmatprep.subr.bf16.mxu0 %v4554_v50 }
 0x100   :  { %4148 = vmatpush3.bf16.msra.mxu1 %v4553_v51 }
 0x101   :  { %4149 = vmatprep.subr.bf16.mxu1 %v4556_v52 }
 0x102   :  { %4128 = vmatpush3.bf16.msra.mxu0 %v4555_v53  ;;  %v4600_v53 = vld [vmem:[#allocation5 + $0x6b8] sm:$0xff]  }
 0x103   :  { %4129 = vmatprep.subr.bf16.mxu0 %v4558_v54  ;;  %v3738_v54 = vld.sshfl [vmem:[#allocation2 + $0x1a] sm:$0x1 pattern:$0x75316420] }
 0x104   :  { %4150 = vmatpush3.bf16.msra.mxu1 %v4557_v55  ;;  %v4933_v55 = vrot.slane %v2851_v41, %v4842_v34 }
 0x105   :  { %4151 = vmatprep.subr.bf16.mxu1 %v4560_v56 }
 0x106   :  { %4130 = vmatpush3.bf16.msra.mxu0 %v4559_v57  ;;  %v4601_v57 = vld [vmem:[#allocation5 + $0x738] sm:$0xff]  }
 0x107   :  { %4131 = vmatprep.subr.bf16.mxu0 %v4562_v58 }
 0x108   :  { %4152 = vmatpush3.bf16.msra.mxu1 %v4561_v59  ;;  %v4603_v59 = vld [vmem:[#allocation5 + $0x780] sm:$0xff]  }
 0x109   :  { %4153 = vmatprep.subr.bf16.mxu1 %v4564_v60  ;;  %v4602_v60 = vld [vmem:[#allocation5 + $0x6f8] sm:$0xff]  }
 0x10a   :  { %4132 = vmatpush3.bf16.msra.mxu0 %v4563_v61  ;;  %v2867_v61 = vcombine.high %v4933_v55, %v4933_v55 }
 0x10b   :  { %4133 = vmatprep.subr.bf16.mxu0 %v4566_v62  ;;  %v2035_v62 = vrot.slane %v3738_v54, %v4842_v34  ;;  %v4638_v54 = vld [vmem:[#allocation5 + $0x8c0] sm:$0xff]  }
 0x10c   :  { %4154 = vmatpush3.bf16.msra.mxu1 %v4565_v63  ;;  %v4605_v63 = vld [vmem:[#allocation5 + $0x800] sm:$0xff]  }
 0x10d   :  { %4155 = vmatprep.subr.bf16.mxu1 %v4568_v0  ;;  %v4604_v0 = vld [vmem:[#allocation5 + $0x740] sm:$0xff]  }
 0x10e   :  { %4134 = vmatpush3.bf16.msra.mxu0 %v4567_v1  ;;  %v2898_v1 = vcombine.high %v4926_v29, %v4926_v29 }
 0x10f   :  { %4135 = vmatprep.subr.bf16.mxu0 %v4570_v2  ;;  %v4945_v2 = vrot.slane %v4920_v24, %v4842_v34  ;;  %v4625_v24 = vld [vmem:[#allocation5 + $0x828] sm:$0xff]  }
 0x110   :  { %4156 = vmatpush3.bf16.msra.mxu1 %v4569_v3  ;;  %v4607_v3 = vld [vmem:[#allocation5 + $0x788] sm:$0xff]  }
 0x111   :  { %4157 = vmatprep.subr.bf16.mxu1 %v4572_v4  ;;  %v4606_v4 = vld [vmem:[#allocation5 + $0x7c0] sm:$0xff]  }
 0x112   :  { %4136 = vmatpush3.bf16.msra.mxu0 %v4571_v5  ;;  %v4948_v5 = vrot.slane %v2867_v61, %v4842_v34  ;;  %v4646_v61 = vld [vmem:[#allocation5 + $0x858] sm:$0xff]  }
 0x113   :  { %4137 = vmatprep.subr.bf16.mxu0 %v4574_v6  ;;  %v4609_v6 = vld [vmem:[#allocation5 + $0x808] sm:$0xff]  }
 0x114   :  { %4158 = vmatpush3.bf16.msra.mxu1 %v4573_v7  ;;  %v4608_v7 = vld [vmem:[#allocation5 + $0x748] sm:$0xff]  }
 0x115   :  { %4159 = vmatprep.subr.bf16.mxu1 %v4576_v8  ;;  %v4611_v8 = vld [vmem:[#allocation5 + $0x790] sm:$0xff]  }
 0x116   :  { %4138 = vmatpush3.bf16.msra.mxu0 %v4575_v9  ;;  %v4610_v9 = vld [vmem:[#allocation5 + $0x7c8] sm:$0xff]  }
 0x117   :  { %4313 = vmatprep.subr.bf16.mxu0 %v4780_v22 }
 0x118   :  { %4160 = vmatpush3.bf16.msra.mxu1 %v4578_v11  ;;  %v4612_v11 = vld [vmem:[#allocation5 + $0x750] sm:$0xff]  }
 0x119   :  { %2590 = vmatmul.mubr.bf16.vlgmr.msra.gmra.mrb[24].mxu0 %v2003_v10  ;;  %4176 = vmatprep.subr.bf16.mxu1 %v4580_v12  ;;  %v4613_v10 = vld [vmem:[#allocation5 + $0x810] sm:$0xff]   ;;  %v4615_v12 = vld [vmem:[#allocation5 + $0x798] sm:$0xff]  }
 0x11a   :  { %4314 = vmatpush3.bf16.msra.mxu0 %v4579_v13  ;;  %4329 = vmatprep.mubr.msk.bf16.mxu0 %vm4781_vm0, %v4780_v22  ;;  %v4614_v13 = vld [vmem:[#allocation5 + $0x7d0] sm:$0xff]  }
 0x11b   :  { %2630 = vmatmul.mubr.bf16.vlgmr.msra.gmra.mrb[24].mxu1 %v2019_v14  ;;  %4315 = vmatprep.subr.bf16.mxu0 %v4780_v22  ;;  %v4617_v14 = vld [vmem:[#allocation5 + $0x818] sm:$0xff]  }
 0x11c   :  { %4177 = vmatpush3.bf16.msra.mxu1 %v4581_v15  ;;  %3387 = vmatprep.mubr.bf16.mxu1 %v4926_v29  ;;  %v4616_v15 = vld [vmem:[#allocation5 + $0x758] sm:$0xff]  }
 0x11d   :  { %4178 = vmatprep.subr.bf16.mxu1 %v4583_v16  ;;  %v4619_v16 = vld [vmem:[#allocation5 + $0x7a0] sm:$0xff]  }
 0x11e   :  { %4316 = vmatpush3.bf16.msra.mxu0 %v4582_v17  ;;  %v4618_v17 = vld [vmem:[#allocation5 + $0x7d8] sm:$0xff]  }
 0x11f   :  { %4317 = vmatprep.subr.bf16.mxu0 %v4780_v22 }
 0x120   :  { %4179 = vmatpush3.bf16.msra.mxu1 %v4584_v18  ;;  %v4621_v18 = vld [vmem:[#allocation5 + $0x820] sm:$0xff]  }
 0x121   :  { %4180 = vmatprep.subr.bf16.mxu1 %v4586_v19  ;;  %v4620_v19 = vld [vmem:[#allocation5 + $0x760] sm:$0xff]  }
 0x122   :  { %4318 = vmatpush3.bf16.msra.mxu0 %v4585_v20  ;;  %v4623_v20 = vld [vmem:[#allocation5 + $0x7a8] sm:$0xff]  }
 0x123   :  { %4319 = vmatprep.subr.bf16.mxu0 %v4780_v22 }
 0x124   :  { %4181 = vmatpush3.bf16.msra.mxu1 %v4587_v25  ;;  %v4624_v25 = vld [vmem:[#allocation5 + $0x768] sm:$0xff]  }
 0x125   :  { %4182 = vmatprep.subr.bf16.mxu1 %v4589_v26  ;;  %v4627_v26 = vld [vmem:[#allocation5 + $0x7b0] sm:$0xff]  }
 0x126   :  { %4320 = vmatpush3.bf16.msra.mxu0 %v4588_v28  ;;  %v4626_v28 = vld [vmem:[#allocation5 + $0x7e8] sm:$0xff]  }
 0x127   :  { %4321 = vmatprep.subr.bf16.mxu0 %v4780_v22 }
 0x128   :  { %4183 = vmatpush3.bf16.msra.mxu1 %v4590_v30  ;;  %v4629_v30 = vld [vmem:[#allocation5 + $0x830] sm:$0xff]  }
 0x129   :  { %4184 = vmatprep.subr.bf16.mxu1 %v4592_v31 }
 0x12a   :  { %4322 = vmatpush3.bf16.msra.mxu0 %v4591_v32 }
 0x12b   :  { %4323 = vmatprep.subr.bf16.mxu0 %v4780_v22 }
 0x12c   :  { %v3901_v39 = vpop.f32.mrb[0].mxu0  ;;  %4185 = vmatpush3.bf16.msra.mxu1 %v4593_v33 }
 0x12d   :  { %v3902_v42 = vpop.f32.mrb[1].mxu0  ;;  %4186 = vmatprep.subr.bf16.mxu1 %v4595_v35  ;;  %v4628_v35 = vld [vmem:[#allocation5 + $0x770] sm:$0xff]  }
 0x12e   :  { %v3903_v44 = vadd.f32 %v3902_v42, %v3901_v39  ;;  %v3904_v45 = vpop.f32.mrb[2].mxu0  ;;  %v3923_v46 = vpop.f32.mrb[0].mxu1  ;;  %4324 = vmatpush3.bf16.msra.mxu0 %v4594_v36  ;;  %v4631_v36 = vld [vmem:[#allocation5 + $0x7b8] sm:$0xff]   ;;  %v4630_v42 = vld [vmem:[#allocation5 + $0x7f0] sm:$0xff]  }
 0x12f   :  { %v3905_v47 = vpop.f32.mrb[3].mxu0  ;;  %v3924_v48 = vpop.f32.mrb[1].mxu1  ;;  %4325 = vmatprep.subr.bf16.mxu0 %v4780_v22  ;;  %v4632_v45 = vld [vmem:[#allocation5 + $0x778] sm:$0xff]  }
 0x130   :  { %v756_v50 = vadd.f32 %v3903_v44, %v3589_v37  ;;  %v3925_v51 = vadd.f32 %v3924_v48, %v3923_v46  ;;  %4187 = vmatpush3.bf16.msra.mxu1 %v4596_v38  ;;  %v3926_v52 = vpop.f32.mrb[2].mxu1  ;;  %v4633_v44 = vld [vmem:[#allocation5 + $0x838] sm:$0xff]   ;;  %v4635_v47 = vld [vmem:[#allocation5 + $0x880] sm:$0xff]  }
 0x131   :  { %v3927_v56 = vpop.f32.mrb[3].mxu1  ;;  %4188 = vmatprep.subr.bf16.mxu1 %v4598_v43  ;;  %v4634_v48 = vld [vmem:[#allocation5 + $0x7f8] sm:$0xff]   ;;  %v4959_v52 = vrot.slane %v4933_v55, %v4842_v34  ;;  %v4643_v55 = vld [vmem:[#allocation5 + $0x850] sm:$0xff]  }
 0x132   :  { %v4935_v58 = vadd.f32 %v3925_v51, %v756_v50  ;;  %4326 = vmatpush3.bf16.msra.mxu0 %v4597_v40  ;;  %v4637_v50 = vld [vmem:[#allocation5 + $0x840] sm:$0xff]   ;;  %v2899_v51 = vcombine.high %v4948_v5, %v4948_v5  ;;  %v4640_v56 = vld [vmem:[#allocation5 + $0x848] sm:$0xff]  }
 0x133   :  { %4327 = vmatprep.subr.bf16.mxu0 %v4780_v22 }
 0x134   :  { %4189 = vmatpush3.bf16.msra.mxu1 %v4599_v49  ;;  %v2896_v49 = vcombine.high %v4945_v2, %v4945_v2 }
 0x135   :  { %4190 = vmatprep.subr.bf16.mxu1 %v4601_v57  ;;  %v4642_v57 = vld [vmem:[#allocation5 + $0x890] sm:$0xff]  }
 0x136   :  { %4328 = vmatpush3.bf16.msra.mxu0 %v4600_v53  ;;  %v4639_v53 = vld [vmem:[#allocation5 + $0x888] sm:$0xff]  }
 0x137   :  { %4198 = vmatprep.subr.bf16.mxu0 %v4603_v59  ;;  %v4645_v59 = vld [vmem:[#allocation5 + $0x898] sm:$0xff]  }
 0x138   :  { %4191 = vmatpush3.bf16.msra.mxu1 %v4602_v60  ;;  %v4644_v60 = vld [vmem:[#allocation5 + $0x8d0] sm:$0xff]  }
 0x139   :  { %4330 = vmatmul.mubr.bf16.vlgmr.msra.gmra.mrb[28].mxu0 %v2035_v62  ;;  %4220 = vmatprep.subr.bf16.mxu1 %v4605_v63  ;;  %v4648_v62 = vld [vmem:[#allocation5 + $0x8a0] sm:$0xff]   ;;  %v4647_v63 = vld [vmem:[#allocation5 + $0x8d8] sm:$0xff]  }
 0x13a   :  { %4199 = vmatpush3.bf16.msra.mxu0 %v4604_v0  ;;  %3427 = vmatprep.mubr.bf16.mxu0 %v2898_v1  ;;  %v58_v0 = vand.u32 127, %v57_v21  ;;  %v4649_v1 = vld [vmem:[#allocation5 + $0x860] sm:$0xff]  }
 0x13b   :  { %3388 = vmatmul.mubr.bf16.vlgmr.msra.gmra.mrb[28].mxu1 %v4945_v2  ;;  %4200 = vmatprep.subr.bf16.mxu0 %v4607_v3  ;;  %v4651_v2 = vld [vmem:[#allocation5 + $0x8a8] sm:$0xff]   ;;  %v4650_v3 = vld [vmem:[#allocation5 + $0x8e0] sm:$0xff]  }
 0x13c   :  { %4221 = vmatpush3.bf16.msra.mxu1 %v4606_v4  ;;  %3467 = vmatprep.mubr.bf16.mxu1 %v4948_v5  ;;  %vm59_vm1 = vcmp.ge.s32.totalorder %v58_v0, 48  ;;  %vm60_vm2 = vcmp.lt.s32.totalorder %v58_v0, 51  ;;  %v4652_v4 = vld [vmem:[#allocation5 + $0x868] sm:$0xff]   ;;  %v4654_v5 = vld [vmem:[#allocation5 + $0x8b0] sm:$0xff]  }
 0x13d   :  { %4222 = vmatprep.subr.bf16.mxu1 %v4609_v6  ;;  %vm4970_vm3 = vmand %vm59_vm1, %vm60_vm2 }
 0x13e   :  { %4201 = vmatpush3.bf16.msra.mxu0 %v4608_v7  ;;  %v4653_v7 = vld [vmem:[#allocation5 + $0x8e8] sm:$0xff]  }
 0x13f   :  { %4202 = vmatprep.subr.bf16.mxu0 %v4611_v8 }
 0x140   :  { %4223 = vmatpush3.bf16.msra.mxu1 %v4610_v9 }
 0x141   :  { %4224 = vmatprep.subr.bf16.mxu1 %v4613_v10 }
 0x142   :  { %4203 = vmatpush3.bf16.msra.mxu0 %v4612_v11 }
 0x143   :  { %4204 = vmatprep.subr.bf16.mxu0 %v4615_v12  ;;  %v4655_v12 = vld [vmem:[#allocation5 + $0x870] sm:$0xff]  }
 0x144   :  { %4225 = vmatpush3.bf16.msra.mxu1 %v4614_v13 }
 0x145   :  { %4226 = vmatprep.subr.bf16.mxu1 %v4617_v14 }
 0x146   :  { %4205 = vmatpush3.bf16.msra.mxu0 %v4616_v15 }
 0x147   :  { %4206 = vmatprep.subr.bf16.mxu0 %v4619_v16  ;;  %v4657_v16 = vld [vmem:[#allocation5 + $0x8b8] sm:$0xff]  }
 0x148   :  { %4227 = vmatpush3.bf16.msra.mxu1 %v4618_v17 }
 0x149   :  { %4228 = vmatprep.subr.bf16.mxu1 %v4621_v18 }
 0x14a   :  { %4207 = vmatpush3.bf16.msra.mxu0 %v4620_v19 }
 0x14b   :  { %4208 = vmatprep.subr.bf16.mxu0 %v4623_v20  ;;  %v4656_v20 = vld [vmem:[#allocation5 + $0x8f0] sm:$0xff]  }
 0x14c   :  { %v3945_v27 = vpop.f32.mrb[4].mxu0  ;;  %4229 = vmatpush3.bf16.msra.mxu1 %v4622_v23 }
 0x14d   :  { %v3946_v29 = vpop.f32.mrb[5].mxu0  ;;  %4230 = vmatprep.subr.bf16.mxu1 %v4625_v24  ;;  %v4658_v24 = vld [vmem:[#allocation5 + $0x878] sm:$0xff]  }
 0x14e   :  { %v3947_v31 = vadd.f32 %v3946_v29, %v3945_v27  ;;  %v3948_v32 = vpop.f32.mrb[6].mxu0  ;;  %v3967_v33 = vpop.f32.mrb[4].mxu1  ;;  %4209 = vmatpush3.bf16.msra.mxu0 %v4624_v25  ;;  %v4659_v25 = vld [vmem:[#allocation5 + $0x8f8] sm:$0xff]   ;;  %v2897_v27 = vcombine.high %v4959_v52, %v4959_v52  ;;  %v3663_v29 = vld [vmem:[#allocation7 + $0x1] ss:$0 sm:$0xff] }
 0x14f   :  { %v3949_v37 = vpop.f32.mrb[7].mxu0  ;;  %v3968_v38 = vpop.f32.mrb[5].mxu1  ;;  %4210 = vmatprep.subr.bf16.mxu0 %v4627_v26  ;;  %v3812_v26 = vld.sshfl [vmem:[#allocation2 + $0x23] sm:$0x1 pattern:$0x75316420] }
 0x150   :  { %v836_v39 = vadd.f32 %v3947_v31, %v4935_v58  ;;  %v3969_v40 = vadd.f32 %v3968_v38, %v3967_v33  ;;  %4231 = vmatpush3.bf16.msra.mxu1 %v4626_v28  ;;  %v3970_v41 = vpop.f32.mrb[6].mxu1  ;;  %v4641_v58 = vld [vmem:[#allocation5 + $0x8c8] sm:$0xff]   ;;  %v2913_v28 = vrot.slane %v3812_v26, %v4842_v34 }
 0x151   :  { %v3971_v43 = vpop.f32.mrb[7].mxu1  ;;  %4232 = vmatprep.subr.bf16.mxu1 %v4629_v30 }
 0x152   :  { %4211 = vmatpush3.bf16.msra.mxu0 %v4628_v35  ;;  %v876_v46 = vadd.f32 %v3969_v40, %v836_v39 }
 0x153   :  { %4212 = vmatprep.subr.bf16.mxu0 %v4631_v36 }
 0x154   :  { %4233 = vmatpush3.bf16.msra.mxu1 %v4630_v42 }
 0x155   :  { %4234 = vmatprep.subr.bf16.mxu1 %v4633_v44 }
 0x156   :  { %4213 = vmatpush3.bf16.msra.mxu0 %v4632_v45 }
 0x157   :  { %4242 = vmatprep.subr.bf16.mxu0 %v4635_v47 }
 0x158   :  { %4235 = vmatpush3.bf16.msra.mxu1 %v4634_v48 }
 0x159   :  { %3428 = vmatmul.mubr.bf16.vlgmr.msra.gmra.mrb[32].mxu0 %v2896_v49  ;;  %4333 = vmatprep.subr.bf16.mxu1 %v4780_v22 }
 0x15a   :  { %4243 = vmatpush3.bf16.msra.mxu0 %v4637_v50  ;;  %3507 = vmatprep.mubr.bf16.mxu0 %v2899_v51 }
 0x15b   :  { %3468 = vmatmul.mubr.bf16.vlgmr.msra.gmra.mrb[32].mxu1 %v4959_v52  ;;  %4244 = vmatprep.subr.bf16.mxu0 %v4639_v53 }
 0x15c   :  { %4334 = vmatpush3.bf16.msra.mxu1 %v4638_v54  ;;  %4349 = vmatprep.mubr.msk.bf16.mxu1 %vm4781_vm0, %v4780_v22 }
 0x15d   :  { %4335 = vmatprep.subr.bf16.mxu1 %v4780_v22 }
 0x15e   :  { %4245 = vmatpush3.bf16.msra.mxu0 %v4640_v56 }
 0x15f   :  { %4246 = vmatprep.subr.bf16.mxu0 %v4642_v57  ;;  %v3737_v57 = vld [vmem:[#allocation7 + $0x2] ss:$0 sm:$0xff] }
 0x160   :  { %4336 = vmatpush3.bf16.msra.mxu1 %v4641_v58 }
 0x161   :  { %4337 = vmatprep.subr.bf16.mxu1 %v4780_v22 }
 0x162   :  { %4247 = vmatpush3.bf16.msra.mxu0 %v4643_v55 }
 0x163   :  { %4248 = vmatprep.subr.bf16.mxu0 %v4645_v59 }
 0x164   :  { %4338 = vmatpush3.bf16.msra.mxu1 %v4644_v60 }
 0x165   :  { %4339 = vmatprep.subr.bf16.mxu1 %v4780_v22 }
 0x166   :  { %4249 = vmatpush3.bf16.msra.mxu0 %v4646_v61 }
 0x167   :  { %4250 = vmatprep.subr.bf16.mxu0 %v4648_v62 }
 0x168   :  { %4340 = vmatpush3.bf16.msra.mxu1 %v4647_v63 }
 0x169   :  { %4341 = vmatprep.subr.bf16.mxu1 %v4780_v22 }
 0x16a   :  { %4251 = vmatpush3.bf16.msra.mxu0 %v4649_v1 }
 0x16b   :  { %4252 = vmatprep.subr.bf16.mxu0 %v4651_v2 }
 0x16c   :  { %v915_v6 = vpop.f32.mrb[8].mxu0  ;;  %4342 = vmatpush3.bf16.msra.mxu1 %v4650_v3 }
 0x16d   :  { %v4974_v21 = vadd.f32 %v915_v6, %v876_v46  ;;  %v4291_v9 = vpop.f32.mrb[9].mxu0  ;;  %4343 = vmatprep.subr.bf16.mxu1 %v4780_v22 }
 0x16e   :  { %v918_v10 = vpop.f32.mrb[10].mxu0  ;;  %4253 = vmatpush3.bf16.msra.mxu0 %v4652_v4  ;;  %v3998_v11 = vpop.f32.mrb[8].mxu1 }
 0x16f   :  { %v4292_v13 = vpop.f32.mrb[11].mxu0  ;;  %v3999_v14 = vpop.f32.mrb[9].mxu1  ;;  %4254 = vmatprep.subr.bf16.mxu0 %v4654_v5  ;;  %v921_v15 = vsel %vm4970_vm3, %v4974_v21, -inf }
 0x170   :  { %v4000_v17 = vadd.f32 %v3999_v14, %v3998_v11  ;;  %4344 = vmatpush3.bf16.msra.mxu1 %v4653_v7  ;;  %v4001_v18 = vpop.f32.mrb[10].mxu1  ;;  %v923_v19 = vsel %vm922_vm4, %v921_v15, -inf }
 0x171   :  { %924 = vmax.xlane.f32.xlu0 %v923_v19  ;;  %v4002_v23 = vpop.f32.mrb[11].mxu1  ;;  %4345 = vmatprep.subr.bf16.mxu1 %v4780_v22 }
 0x172   :  { %4255 = vmatpush3.bf16.msra.mxu0 %v4655_v12  ;;  %v1634_v32 = vadd.f32 %v4000_v17, %v3663_v29 }
 0x173   :  { %4256 = vmatprep.subr.bf16.mxu0 %v4657_v16 }
 0x174   :  { %4346 = vmatpush3.bf16.msra.mxu1 %v4656_v20 }
 0x175   :  { %4347 = vmatprep.subr.bf16.mxu1 %v4780_v22 }
 0x176   :  { %4257 = vmatpush3.bf16.msra.mxu0 %v4658_v24 }
 0x178   :  { %4348 = vmatpush3.bf16.msra.mxu1 %v4659_v25 }
 0x179   :  { %3508 = vmatmul.mubr.bf16.vlgmr.msra.gmra.mrb[36].mxu0 %v2897_v27 }
 0x17b   :  { %4350 = vmatmul.mubr.bf16.vlgmr.msra.gmra.mrb[36].mxu1 %v2913_v28 }
 0x18c   :  { %v4020_v30 = vpop.f32.mrb[12].mxu0 }
 0x18d   :  { %v4021_v31 = vpop.f32.mrb[13].mxu0 }
 0x18e   :  { %v4022_v33 = vadd.f32 %v4021_v31, %v4020_v30  ;;  %v4023_v35 = vpop.f32.mrb[14].mxu0  ;;  %v4042_v36 = vpop.f32.mrb[12].mxu1 }
 0x18f   :  { %v4024_v37 = vpop.f32.mrb[15].mxu0  ;;  %v4043_v38 = vpop.f32.mrb[13].mxu1 }
 0x190   :  { %v1674_v39 = vadd.f32 %v4022_v33, %v1634_v32  ;;  %v4044_v22 = vadd.f32 %v4043_v38, %v4042_v36  ;;  %v4045_v40 = vpop.f32.mrb[14].mxu1  ;;  %v3811_v38 = vld [vmem:[#allocation7 + $0x3] ss:$0 sm:$0xff] }
 0x191   :  { %v4046_v41 = vpop.f32.mrb[15].mxu1 }
 0x192   :  { %v1714_v42 = vadd.f32 %v4044_v22, %v1674_v39 }
 0x1ac   :  { %v4064_v43 = vpop.f32.mrb[16].mxu0 }
 0x1ad   :  { %v4065_v44 = vpop.f32.mrb[17].mxu0 }
 0x1ae   :  { %v4066_v34 = vadd.f32 %v4065_v44, %v4064_v43  ;;  %v4067_v45 = vpop.f32.mrb[18].mxu0  ;;  %v1793_v46 = vpop.f32.mrb[16].mxu1 }
 0x1af   :  { %v4068_v47 = vpop.f32.mrb[19].mxu0  ;;  %v4311_v48 = vpop.f32.mrb[17].mxu1 }
 0x1b0   :  { %v1754_v49 = vadd.f32 %v4066_v34, %v1714_v42  ;;  %v1796_v50 = vpop.f32.mrb[18].mxu1 }
 0x1b1   :  { %v4312_v51 = vpop.f32.mrb[19].mxu1 }
 0x1b2   :  { %v4986_v52 = vadd.f32 %v1793_v46, %v1754_v49 }
 0x1b4   :  { %v1799_v53 = vsel %vm4970_vm3, %v4986_v52, -inf }
 0x1b5   :  { %v1800_v54 = vsel %vm922_vm4, %v1799_v53, -inf }
 0x1b6   :  { %1801 = vmax.xlane.f32.xlu0 %v1800_v54 }
 0x1cc   :  { %v4095_v56 = vpop.f32.mrb[20].mxu0 }
 0x1cd   :  { %v4096_v58 = vpop.f32.mrb[21].mxu0 }
 0x1ce   :  { %v4097_v55 = vadd.f32 %v4096_v58, %v4095_v56  ;;  %v4098_v59 = vpop.f32.mrb[22].mxu0  ;;  %v4117_v60 = vpop.f32.mrb[20].mxu1 }
 0x1cf   :  { %v4099_v61 = vpop.f32.mrb[23].mxu0  ;;  %v4118_v62 = vpop.f32.mrb[21].mxu1 }
 0x1d0   :  { %v2512_v63 = vadd.f32 %v4097_v55, %v3737_v57  ;;  %v4119_v0 = vadd.f32 %v4118_v62, %v4117_v60  ;;  %v4120_v1 = vpop.f32.mrb[22].mxu1 }
 0x1d1   :  { %v4121_v2 = vpop.f32.mrb[23].mxu1 }
 0x1d2   :  { %v2552_v3 = vadd.f32 %v4119_v0, %v2512_v63 }
 0x1ec   :  { %v4139_v4 = vpop.f32.mrb[24].mxu0 }
 0x1ed   :  { %v4140_v5 = vpop.f32.mrb[25].mxu0 }
 0x1ee   :  { %v4141_v6 = vadd.f32 %v4140_v5, %v4139_v4  ;;  %v4142_v7 = vpop.f32.mrb[26].mxu0  ;;  %v4161_v9 = vpop.f32.mrb[24].mxu1 }
 0x1ef   :  { %v4143_v10 = vpop.f32.mrb[27].mxu0  ;;  %v4162_v11 = vpop.f32.mrb[25].mxu1 }
 0x1f0   :  { %v2592_v12 = vadd.f32 %v4141_v6, %v2552_v3  ;;  %v4163_v13 = vadd.f32 %v4162_v11, %v4161_v9  ;;  %v4164_v14 = vpop.f32.mrb[26].mxu1 }
 0x1f1   :  { %v4165_v15 = vpop.f32.mrb[27].mxu1 }
 0x1f2   :  { %v2632_v16 = vadd.f32 %v4163_v13, %v2592_v12 }
 0x1fe   :  { %v925_v17 = vpop.xlane.xlu0 %924 }
 0x1ff   :  { %v926_v18 = vsub.f32 %v4974_v21, %v925_v17 }
 0x201   :  { %v927_v19 = vsel %vm4970_vm3, %v926_v18, -inf }
 0x202   :  { %v928_v20 = vmul.f32 1.442695, %v927_v19 }
 0x204   :  { %4660 = vpow2.f32 %v928_v20 }
 0x20c   :  { %v2671_v23 = vpop.f32.mrb[28].mxu0 }
 0x20d   :  { %v4995_v24 = vadd.f32 %v2671_v23, %v2632_v16  ;;  %v4331_v25 = vpop.f32.mrb[29].mxu0 }
 0x20e   :  { %v4661_v26 = vpop.eup %4660  ;;  %v2674_v27 = vpop.f32.mrb[30].mxu0 }
 0x20f   :  { %v4192_v28 = vpop.f32.mrb[28].mxu1  ;;  %v4332_v29 = vpop.f32.mrb[31].mxu0  ;;  %v930_v31 = vsel %vm922_vm4, %v4661_v26, 0.0  ;;  %v2677_v32 = vsel %vm4970_vm3, %v4995_v24, -inf }
 0x210   :  { %v4193_v30 = vpop.f32.mrb[29].mxu1  ;;  %931 = vadd.xlane.f32.xlu0 %v930_v31  ;;  %v2678_v36 = vsel %vm922_vm4, %v2677_v32, -inf }
 0x211   :  { %v4194_v33 = vadd.f32 %v4193_v30, %v4192_v28  ;;  %v4195_v35 = vpop.f32.mrb[30].mxu1  ;;  %2679 = vmax.xlane.f32.xlu1 %v2678_v36 }
 0x212   :  { %v4196_v37 = vpop.f32.mrb[31].mxu1 }
 0x213   :  { %v3390_v40 = vadd.f32 %v4194_v33, %v3811_v38 }
 0x22c   :  { %v4214_v39 = vpop.f32.mrb[32].mxu0 }
 0x22d   :  { %v4215_v22 = vpop.f32.mrb[33].mxu0 }
 0x22e   :  { %v4216_v41 = vadd.f32 %v4215_v22, %v4214_v39  ;;  %v4217_v42 = vpop.f32.mrb[34].mxu0  ;;  %v4236_v43 = vpop.f32.mrb[32].mxu1 }
 0x22f   :  { %v4218_v44 = vpop.f32.mrb[35].mxu0  ;;  %v4237_v34 = vpop.f32.mrb[33].mxu1 }
 0x230   :  { %v3430_v45 = vadd.f32 %v4216_v41, %v3390_v40  ;;  %v4238_v46 = vadd.f32 %v4237_v34, %v4236_v43  ;;  %v4239_v47 = vpop.f32.mrb[34].mxu1 }
 0x231   :  { %v4240_v48 = vpop.f32.mrb[35].mxu1 }
 0x232   :  { %v3470_v49 = vadd.f32 %v4238_v46, %v3430_v45 }
 0x243   :  { %v1802_v50 = vpop.xlane.xlu0 %1801 }
 0x244   :  { %v1803_v51 = vsub.f32 %v4986_v52, %v1802_v50 }
 0x246   :  { %v1804_v53 = vsel %vm4970_vm3, %v1803_v51, -inf }
 0x247   :  { %v1805_v54 = vmul.f32 1.442695, %v1804_v53 }
 0x249   :  { %4662 = vpow2.f32 %v1805_v54 }
 0x24c   :  { %v4258_v56 = vpop.f32.mrb[36].mxu0 }
 0x24d   :  { %v4259_v57 = vpop.f32.mrb[37].mxu0 }
 0x24e   :  { %v4260_v58 = vadd.f32 %v4259_v57, %v4258_v56  ;;  %v4261_v55 = vpop.f32.mrb[38].mxu0  ;;  %v3549_v59 = vpop.f32.mrb[36].mxu1 }
 0x24f   :  { %v4262_v60 = vpop.f32.mrb[39].mxu0  ;;  %v4351_v61 = vpop.f32.mrb[37].mxu1 }
 0x250   :  { %v3510_v62 = vadd.f32 %v4260_v58, %v3470_v49  ;;  %v3552_v63 = vpop.f32.mrb[38].mxu1 }
 0x251   :  { %v4352_v0 = vpop.f32.mrb[39].mxu1 }
 0x252   :  { %v3550_v1 = vadd.f32 %v3549_v59, %v3510_v62 }
 0x253   :  { %v4663_v4 = vpop.eup %4662 }
 0x254   :  { %v3555_v2 = vsel %vm4970_vm3, %v3550_v1, -inf  ;;  %v1807_v5 = vsel %vm922_vm4, %v4663_v4, 0.0 }
 0x255   :  { %v3556_v3 = vsel %vm922_vm4, %v3555_v2, -inf }
 0x256   :  { %3557 = vmax.xlane.f32.xlu1 %v3556_v3 }
 0x25a   :  { %1808 = vadd.xlane.f32.xlu1 %v1807_v5 }
 0x29d   :  { %v932_v6 = vpop.xlane.xlu0 %931 }
 0x29e   :  { %4664 = vrcp.f32 %v932_v6  ;;  %v2680_v7 = vpop.xlane.xlu1 %2679 }
 0x29f   :  { %v2681_v9 = vsub.f32 %v4995_v24, %v2680_v7 }
 0x2a1   :  { %v2682_v10 = vsel %vm4970_vm3, %v2681_v9, -inf }
 0x2a2   :  { %v2683_v11 = vmul.f32 1.442695, %v2682_v10 }
 0x2a4   :  { %4666 = vpow2.f32 %v2683_v11 }
 0x2a8   :  { %v4665_v12 = vpop.eup %4664 }
 0x2a9   :  { %v934_v13 = vmul.f32 %v4665_v12, %v4661_v26 }
 0x2ab   :  { %v935_v14 = vsel %vm4970_vm3, %v934_v13, %v4974_v21 }
 0x2ac   :  { %936 = vst [vmem:[#allocation8] sm:$0x3] %v935_v14 }
 0x2ae   :  { %v4667_v15 = vpop.eup %4666 }
 0x2af   :  { %v2685_v16 = vsel %vm922_vm4, %v4667_v15, 0.0 }
 0x2b0   :  { %2686 = vadd.xlane.f32.xlu0 %v2685_v16 }
 0x2e3   :  { %v3558_v17 = vpop.xlane.xlu1 %3557 }
 0x2e4   :  { %v3559_v18 = vsub.f32 %v3550_v1, %v3558_v17 }
 0x2e6   :  { %v3560_v19 = vsel %vm4970_vm3, %v3559_v18, -inf }
 0x2e7   :  { %v3561_v20 = vmul.f32 1.442695, %v3560_v19  ;;  %v1809_v23 = vpop.xlane.xlu1 %1808 }
 0x2e8   :  { %4668 = vrcp.f32 %v1809_v23 }
 0x2e9   :  { %4670 = vpow2.f32 %v3561_v20 }
 0x2f2   :  { %v4669_v25 = vpop.eup %4668 }
 0x2f3   :  { %v4671_v26 = vpop.eup %4670  ;;  %v1811_v27 = vmul.f32 %v4669_v25, %v4663_v4 }
 0x2f4   :  { %v3563_v28 = vsel %vm922_vm4, %v4671_v26, 0.0 }
 0x2f5   :  { %v1812_v21 = vsel %vm4970_vm3, %v1811_v27, %v4986_v52  ;;  %3564 = vadd.xlane.f32.xlu1 %v3563_v28 }
 0x2f6   :  { %1814 = vst [vmem:[#allocation8 + $0x2] sm:$0x3] %v1812_v21 }
 0x33d   :  { %v2687_v29 = vpop.xlane.xlu0 %2686 }
 0x33e   :  { %4672 = vrcp.f32 %v2687_v29 }
 0x348   :  { %v4673_v30 = vpop.eup %4672 }
 0x349   :  { %v2689_v31 = vmul.f32 %v4673_v30, %v4667_v15 }
 0x34b   :  { %v2690_v32 = vsel %vm4970_vm3, %v2689_v31, %v4995_v24 }
 0x34c   :  { %2692 = vst [vmem:[#allocation8 + $0x4] sm:$0x3] %v2690_v32 }
 0x382   :  { %v3565_v33 = vpop.xlane.xlu1 %3564 }
 0x383   :  { %4674 = vrcp.f32 %v3565_v33 }
 0x38d   :  { %v4675_v35 = vpop.eup %4674 }
 0x38e   :  { %v3567_v36 = vmul.f32 %v4675_v35, %v4671_v26 }
 0x390   :  { %v3568_v52 = vsel %vm4970_vm3, %v3567_v36, %v3550_v1 }
 0x391   :  { %3570 = vst [vmem:[#allocation8 + $0x6] sm:$0x3] %v3568_v52 }
 0x392   :  { %4753 = shalt.err (!%p4750_p0)
}
 0x393   :  { %s4754_s29 = scalar_lea.hbm %s5042_s3, 128 }
 0x394   :  { %p4755_p1 = scmp.ne.s32.totalorder %s5042_s3, %s4754_s29  ;;  %p4758_p2 = scmp.lt.u32.totalorder %s4754_s29, %s5042_s3 }
 0x396   :  { %p4760_p3 = pnand %p4758_p2, %p4755_p1 }
 0x398   :  { %4763 = shalt.err (!%p4760_p3)
}
 0x399   :  { %s4783_s7 = smov 32   ;;  %s4784_s8 = smov 2  }
 0x39a   :  { %3582 = dma.vmem_to_hbm [thread:$0]  %s3577_s25, 128, %s5042_s3, [#allocation4], %s4783_s7, %s4783_s7, %s4784_s8  }
 0x39b   :  { %4768 = dma.done.wait [#allocation4], 128  }
 0x39c   :  { %4769 = vsyncadd [#allocation4], 4294967168 }
 0x39d   :  { %3586 = vsyncpa [#allocation3], 1 }
 0x39e   :  { %3587 = vsyncpa [#allocation6], 1 }
 0x39f   :  { %3588 = vsyncpa [#allocation4], 1 }

</bundles_post_ra>
